<compile_context>
chip_gen: v5e
topology: v5e:2x2
jax: 0.10.0
libtpu: 0.0.40
codegen_flags: <defaults>
</compile_context>

<pallas_src>
import functools

import jax
import jax.numpy as jnp
from jax.experimental import pallas as pl
from jax.experimental.pallas import tpu as pltpu


def fpn_block_kernel(x_ref, skip_ref, w_ref, b_ref, rep_ref, o_ref, *, row_tile):
    # x_ref:    (1, Cp, Th, W)     input rows
    # skip_ref: (1, Cs, Th, 4W)    skip rows (row t packs original rows 2t | 2t+1)
    # w_ref:    (Cp, Cs)           1x1 conv weight (resident)
    # b_ref:    (Cp, 1)            1x1 conv bias   (resident)
    # rep_ref:  (W, 4W)            0/1 nearest-upsample matrix (resident)
    # o_ref:    (1, Cp, Th, 4W)    output rows (same row-pair packing as skip)
    w = w_ref[...]
    rep = rep_ref[...]
    b = b_ref[...].astype(jnp.float32)           # (Cp, 1)

    # Static per-row loop (Th is a small compile-time constant).  Every matmul
    # is 2-D on the MXU; every load/store is a contiguous full-width slab.
    for t in range(row_tile):
        s_t = skip_ref[0, :, t, :]               # (Cs, 4W)
        x_t = x_ref[0, :, t, :]                  # (Cp, W)
        # 1x1 conv over channels, f32 accumulation.
        conv = jnp.dot(w, s_t, preferred_element_type=jnp.float32) + b    # (Cp, 4W)
        # Fused 2x2 nearest upsample of input row t -> output rows 2t, 2t+1.
        x_up = jnp.dot(x_t, rep, preferred_element_type=jnp.float32)      # (Cp, 4W)
        o_ref[0, :, t, :] = (conv + x_up).astype(o_ref.dtype)


def _vmem_capacity_bytes():
    try:
        cap = getattr(pltpu.get_tpu_info(), "vmem_capacity_bytes", None)
        if cap:
            return int(cap)
    except Exception:
        pass
    return 64 * 1024 * 1024   # conservative default = v7x per-TensorCore VMEM


def _tile_vmem_bytes(th, w, cp, cs, itemsize):
    """Estimated VMEM for one grid step: double-buffered x/skip/out blocks,
    (default double-buffered) resident operands, plus scratch headroom for the
    per-row f32 temporaries and compiler internals."""
    x_b = cp * th * w * itemsize
    s_b = cs * th * 4 * w * itemsize
    o_b = cp * th * 4 * w * itemsize
    resident = 2 * (cp * cs + cp + w * 4 * w) * itemsize
    scratch = 2 * 1024 * 1024
    return 2 * (x_b + s_b + o_b) + resident + scratch


def _choose_row_tile(n, h, w, cp, cs, itemsize, budget_bytes, max_tile=32):
    # Legal: Th divides H and (Th % 8 == 0 or Th == H) -- the BlockSpec
    # second-to-last-dim rule; no lane-dim constraint since W / 4W are full dims.
    legal = [t for t in range(1, min(h, max_tile) + 1)
             if h % t == 0 and (t % 8 == 0 or t == h)]
    if not legal:
        legal = [h]                       # full-height tile is always legal
    fitting = sorted((t for t in legal
                      if _tile_vmem_bytes(t, w, cp, cs, itemsize) <= budget_bytes),
                     reverse=True)
    if not fitting:
        return min(legal)                 # nothing fits the budget; take the smallest
    for t in fitting:                     # prefer an even total grid (v7x: 2 TCs)
        if (n * (h // t)) % 2 == 0:
            return t
    return fitting[0]


def fpn_block(x, skip, weight, bias, *, row_tile=None):
    """x: (N, Cp, H, W), skip: (N, Cs, 2H, 2W), weight: (Cp, Cs), bias: (Cp,)."""
    n, cp, h, w = x.shape
    ns, cs, h2, w2 = skip.shape
    assert ns == n and h2 == 2 * h and w2 == 2 * w
    assert weight.shape == (cp, cs) and bias.shape == (cp,)

    itemsize = jnp.dtype(x.dtype).itemsize
    cap = _vmem_capacity_bytes()
    budget = min(int(0.45 * cap), 64 * 1024 * 1024)
    th = row_tile if row_tile is not None else _choose_row_tile(
        n, h, w, cp, cs, itemsize, budget)
    assert h % th == 0 and (th % 8 == 0 or th == h)
    n_tiles = h // th

    # Free, contiguous reshapes only: a (2H, 2W) image and an (H, 4W) image
    # have identical row-major layout (row t packs original rows 2t | 2t+1).
    skip4 = skip.reshape(n, cs, h, 4 * w)
    b2 = bias.reshape(cp, 1)

    # Resident (W, 4W) 0/1 nearest-upsample matrix: output column u pulls input
    # column (u % 2W) // 2 -- exact in any dtype, built once, kept in VMEM.
    rows = jax.lax.broadcasted_iota(jnp.int32, (w, 4 * w), 0)
    cols = jax.lax.broadcasted_iota(jnp.int32, (w, 4 * w), 1)
    rep4 = (rows == (cols % (2 * w)) // 2).astype(x.dtype)

    est = _tile_vmem_bytes(th, w, cp, cs, itemsize)
    vmem_limit = min(int(0.85 * cap), max(est + (8 << 20), 32 << 20))

    out4 = pl.pallas_call(
        functools.partial(fpn_block_kernel, row_tile=th),
        out_shape=jax.ShapeDtypeStruct((n, cp, h, 4 * w), x.dtype),
        grid=(n, n_tiles),
        in_specs=[
            pl.BlockSpec((1, cp, th, w), lambda ni, j: (ni, 0, j, 0)),
            pl.BlockSpec((1, cs, th, 4 * w), lambda ni, j: (ni, 0, j, 0)),
            pl.BlockSpec((cp, cs), lambda ni, j: (0, 0)),
            pl.BlockSpec((cp, 1), lambda ni, j: (0, 0)),
            pl.BlockSpec((w, 4 * w), lambda ni, j: (0, 0)),
        ],
        out_specs=pl.BlockSpec((1, cp, th, 4 * w), lambda ni, j: (ni, 0, j, 0)),
        compiler_params=pltpu.CompilerParams(
            dimension_semantics=("parallel", "parallel"),
            vmem_limit_bytes=vmem_limit,
        ),
    )(x, skip4, weight, b2, rep4)

    return out4.reshape(n, cp, 2 * h, 2 * w)


def fpn_block_reference(x, skip, weight, bias):
    x_up = jnp.repeat(jnp.repeat(x, 2, axis=2), 2, axis=3)
    conv = jnp.einsum("oc,nchw->nohw", weight, skip) + bias[None, :, None, None]
    return x_up + conv


if __name__ == "__main__":
    key = jax.random.PRNGKey(0)
    k_x, k_s, k_w, k_b = jax.random.split(key, 4)

    N, Cp, Cs, H, W = 2, 4, 6, 16, 16
    x = jax.random.normal(k_x, (N, Cp, H, W), dtype=jnp.float32)
    skip = jax.random.normal(k_s, (N, Cs, 2 * H, 2 * W), dtype=jnp.float32)
    # Deterministic synthetic parameters for nn.Conv2d(Cs, Cp, kernel_size=1).
    weight = 0.1 * jax.random.normal(k_w, (Cp, Cs), dtype=jnp.float32)
    bias = 0.1 * jax.random.normal(k_b, (Cp,), dtype=jnp.float32)

    out = fpn_block(x, skip, weight, bias)
    jax.block_until_ready(out)

    ref = fpn_block_reference(x, skip, weight, bias)
    assert out.shape == (N, Cp, 2 * H, 2 * W), out.shape
    assert jnp.allclose(out, ref, atol=1e-4, rtol=1e-4), "mismatch vs reference"

    print("KERNEL_OK")
</pallas_src>

<mosaic_0001>
module attributes {stable_mosaic.version = 11 : i64} {
  func.func @fpn_block_kernel(%arg0: i32, %arg1: i32, %arg2: memref<1x4x16x16xf32, #tpu.memory_space<vmem>>, %arg3: memref<1x6x16x64xf32, #tpu.memory_space<vmem>>, %arg4: memref<4x6xf32, #tpu.memory_space<vmem>>, %arg5: memref<4x1xf32, #tpu.memory_space<vmem>>, %arg6: memref<16x64xf32, #tpu.memory_space<vmem>>, %arg7: memref<1x4x16x64xf32, #tpu.memory_space<vmem>>) attributes {dimension_semantics = [#tpu.dimension_semantics<parallel>, #tpu.dimension_semantics<parallel>], iteration_bounds = array<i64: 2, 1>, scalar_prefetch = 0 : i64, scratch_operands = 0 : i64, tpu.core_type = #tpu.core_type<tc>, window_params = [{transform_indices = @transform_0, window_bounds = array<i64: 1, 4, 16, 16>}, {transform_indices = @transform_1, window_bounds = array<i64: 1, 6, 16, 64>}, {pipeline_mode = #tpu.pipeline_mode<synchronous>, transform_indices = @transform_2, window_bounds = array<i64: 4, 6>}, {pipeline_mode = #tpu.pipeline_mode<synchronous>, transform_indices = @transform_3, window_bounds = array<i64: 4, 1>}, {pipeline_mode = #tpu.pipeline_mode<synchronous>, transform_indices = @transform_4, window_bounds = array<i64: 16, 64>}, {transform_indices = @transform_5, window_bounds = array<i64: 1, 4, 16, 64>}]} {
    %c0 = arith.constant 0 : index
    %c0_0 = arith.constant 0 : index
    %0 = vector.load %arg4[%c0, %c0_0] : memref<4x6xf32, #tpu.memory_space<vmem>>, vector<4x6xf32>
    %c0_1 = arith.constant 0 : index
    %c0_2 = arith.constant 0 : index
    %1 = vector.load %arg6[%c0_1, %c0_2] : memref<16x64xf32, #tpu.memory_space<vmem>>, vector<16x64xf32>
    %c0_3 = arith.constant 0 : index
    %c0_4 = arith.constant 0 : index
    %2 = vector.load %arg5[%c0_3, %c0_4] : memref<4x1xf32, #tpu.memory_space<vmem>>, vector<4x1xf32>
    %c0_5 = arith.constant 0 : index
    %c0_6 = arith.constant 0 : index
    %c0_7 = arith.constant 0 : index
    %c0_8 = arith.constant 0 : index
    %3 = vector.load %arg3[%c0_5, %c0_6, %c0_7, %c0_8] : memref<1x6x16x64xf32, #tpu.memory_space<vmem>>, vector<1x6x1x64xf32>
    %4 = vector.shape_cast %3 : vector<1x6x1x64xf32> to vector<6x64xf32>
    %c0_9 = arith.constant 0 : index
    %c0_10 = arith.constant 0 : index
    %c0_11 = arith.constant 0 : index
    %c0_12 = arith.constant 0 : index
    %5 = vector.load %arg2[%c0_9, %c0_10, %c0_11, %c0_12] : memref<1x4x16x16xf32, #tpu.memory_space<vmem>>, vector<1x4x1x16xf32>
    %6 = vector.shape_cast %5 : vector<1x4x1x16xf32> to vector<4x16xf32>
    %cst = arith.constant dense<0.000000e+00> : vector<4x64xf32>
    %7 = tpu.matmul %0, %4, %cst {dimension_numbers = #tpu.dot_dimension_numbers<[1], [0], [0], [1], [0, 0, 1, 1], [], []>} : vector<4x6xf32>, vector<6x64xf32>, vector<4x64xf32> -> vector<4x64xf32>
    %8 = vector.broadcast %2 : vector<4x1xf32> to vector<4x64xf32>
    %9 = arith.addf %7, %8 : vector<4x64xf32>
    %cst_13 = arith.constant dense<0.000000e+00> : vector<4x64xf32>
    %10 = tpu.matmul %6, %1, %cst_13 {dimension_numbers = #tpu.dot_dimension_numbers<[1], [0], [0], [1], [0, 0, 1, 1], [], []>} : vector<4x16xf32>, vector<16x64xf32>, vector<4x64xf32> -> vector<4x64xf32>
    %11 = arith.addf %9, %10 : vector<4x64xf32>
    %c0_14 = arith.constant 0 : index
    %c0_15 = arith.constant 0 : index
    %c0_16 = arith.constant 0 : index
    %c0_17 = arith.constant 0 : index
    %12 = vector.load %arg7[%c0_14, %c0_15, %c0_16, %c0_17] : memref<1x4x16x64xf32, #tpu.memory_space<vmem>>, vector<1x4x1x64xf32>
    %13 = vector.shape_cast %12 : vector<1x4x1x64xf32> to vector<4x64xf32>
    %14 = vector.shape_cast %11 : vector<4x64xf32> to vector<1x4x1x64xf32>
    tpu.vector_store %arg7[%c0_14, %c0_15, %c0_16, %c0_17], %14 {strides = array<i32>} : memref<1x4x16x64xf32, #tpu.memory_space<vmem>>, vector<1x4x1x64xf32>,
    %c0_18 = arith.constant 0 : index
    %c0_19 = arith.constant 0 : index
    %c1 = arith.constant 1 : index
    %c0_20 = arith.constant 0 : index
    %15 = vector.load %arg3[%c0_18, %c0_19, %c1, %c0_20] : memref<1x6x16x64xf32, #tpu.memory_space<vmem>>, vector<1x6x1x64xf32>
    %16 = vector.shape_cast %15 : vector<1x6x1x64xf32> to vector<6x64xf32>
    %c0_21 = arith.constant 0 : index
    %c0_22 = arith.constant 0 : index
    %c1_23 = arith.constant 1 : index
    %c0_24 = arith.constant 0 : index
    %17 = vector.load %arg2[%c0_21, %c0_22, %c1_23, %c0_24] : memref<1x4x16x16xf32, #tpu.memory_space<vmem>>, vector<1x4x1x16xf32>
    %18 = vector.shape_cast %17 : vector<1x4x1x16xf32> to vector<4x16xf32>
    %cst_25 = arith.constant dense<0.000000e+00> : vector<4x64xf32>
    %19 = tpu.matmul %0, %16, %cst_25 {dimension_numbers = #tpu.dot_dimension_numbers<[1], [0], [0], [1], [0, 0, 1, 1], [], []>} : vector<4x6xf32>, vector<6x64xf32>, vector<4x64xf32> -> vector<4x64xf32>
    %20 = vector.broadcast %2 : vector<4x1xf32> to vector<4x64xf32>
    %21 = arith.addf %19, %20 : vector<4x64xf32>
    %cst_26 = arith.constant dense<0.000000e+00> : vector<4x64xf32>
    %22 = tpu.matmul %18, %1, %cst_26 {dimension_numbers = #tpu.dot_dimension_numbers<[1], [0], [0], [1], [0, 0, 1, 1], [], []>} : vector<4x16xf32>, vector<16x64xf32>, vector<4x64xf32> -> vector<4x64xf32>
    %23 = arith.addf %21, %22 : vector<4x64xf32>
    %c0_27 = arith.constant 0 : index
    %c0_28 = arith.constant 0 : index
    %c1_29 = arith.constant 1 : index
    %c0_30 = arith.constant 0 : index
    %24 = vector.load %arg7[%c0_27, %c0_28, %c1_29, %c0_30] : memref<1x4x16x64xf32, #tpu.memory_space<vmem>>, vector<1x4x1x64xf32>
    %25 = vector.shape_cast %24 : vector<1x4x1x64xf32> to vector<4x64xf32>
    %26 = vector.shape_cast %23 : vector<4x64xf32> to vector<1x4x1x64xf32>
    tpu.vector_store %arg7[%c0_27, %c0_28, %c1_29, %c0_30], %26 {strides = array<i32>} : memref<1x4x16x64xf32, #tpu.memory_space<vmem>>, vector<1x4x1x64xf32>,
    %c0_31 = arith.constant 0 : index
    %c0_32 = arith.constant 0 : index
    %c2 = arith.constant 2 : index
    %c0_33 = arith.constant 0 : index
    %27 = vector.load %arg3[%c0_31, %c0_32, %c2, %c0_33] : memref<1x6x16x64xf32, #tpu.memory_space<vmem>>, vector<1x6x1x64xf32>
    %28 = vector.shape_cast %27 : vector<1x6x1x64xf32> to vector<6x64xf32>
    %c0_34 = arith.constant 0 : index
    %c0_35 = arith.constant 0 : index
    %c2_36 = arith.constant 2 : index
    %c0_37 = arith.constant 0 : index
    %29 = vector.load %arg2[%c0_34, %c0_35, %c2_36, %c0_37] : memref<1x4x16x16xf32, #tpu.memory_space<vmem>>, vector<1x4x1x16xf32>
    %30 = vector.shape_cast %29 : vector<1x4x1x16xf32> to vector<4x16xf32>
    %cst_38 = arith.constant dense<0.000000e+00> : vector<4x64xf32>
    %31 = tpu.matmul %0, %28, %cst_38 {dimension_numbers = #tpu.dot_dimension_numbers<[1], [0], [0], [1], [0, 0, 1, 1], [], []>} : vector<4x6xf32>, vector<6x64xf32>, vector<4x64xf32> -> vector<4x64xf32>
    %32 = vector.broadcast %2 : vector<4x1xf32> to vector<4x64xf32>
    %33 = arith.addf %31, %32 : vector<4x64xf32>
    %cst_39 = arith.constant dense<0.000000e+00> : vector<4x64xf32>
    %34 = tpu.matmul %30, %1, %cst_39 {dimension_numbers = #tpu.dot_dimension_numbers<[1], [0], [0], [1], [0, 0, 1, 1], [], []>} : vector<4x16xf32>, vector<16x64xf32>, vector<4x64xf32> -> vector<4x64xf32>
    %35 = arith.addf %33, %34 : vector<4x64xf32>
    %c0_40 = arith.constant 0 : index
    %c0_41 = arith.constant 0 : index
    %c2_42 = arith.constant 2 : index
    %c0_43 = arith.constant 0 : index
    %36 = vector.load %arg7[%c0_40, %c0_41, %c2_42, %c0_43] : memref<1x4x16x64xf32, #tpu.memory_space<vmem>>, vector<1x4x1x64xf32>
    %37 = vector.shape_cast %36 : vector<1x4x1x64xf32> to vector<4x64xf32>
    %38 = vector.shape_cast %35 : vector<4x64xf32> to vector<1x4x1x64xf32>
    tpu.vector_store %arg7[%c0_40, %c0_41, %c2_42, %c0_43], %38 {strides = array<i32>} : memref<1x4x16x64xf32, #tpu.memory_space<vmem>>, vector<1x4x1x64xf32>,
    %c0_44 = arith.constant 0 : index
    %c0_45 = arith.constant 0 : index
    %c3 = arith.constant 3 : index
    %c0_46 = arith.constant 0 : index
    %39 = vector.load %arg3[%c0_44, %c0_45, %c3, %c0_46] : memref<1x6x16x64xf32, #tpu.memory_space<vmem>>, vector<1x6x1x64xf32>
    %40 = vector.shape_cast %39 : vector<1x6x1x64xf32> to vector<6x64xf32>
    %c0_47 = arith.constant 0 : index
    %c0_48 = arith.constant 0 : index
    %c3_49 = arith.constant 3 : index
    %c0_50 = arith.constant 0 : index
    %41 = vector.load %arg2[%c0_47, %c0_48, %c3_49, %c0_50] : memref<1x4x16x16xf32, #tpu.memory_space<vmem>>, vector<1x4x1x16xf32>
    %42 = vector.shape_cast %41 : vector<1x4x1x16xf32> to vector<4x16xf32>
    %cst_51 = arith.constant dense<0.000000e+00> : vector<4x64xf32>
    %43 = tpu.matmul %0, %40, %cst_51 {dimension_numbers = #tpu.dot_dimension_numbers<[1], [0], [0], [1], [0, 0, 1, 1], [], []>} : vector<4x6xf32>, vector<6x64xf32>, vector<4x64xf32> -> vector<4x64xf32>
    %44 = vector.broadcast %2 : vector<4x1xf32> to vector<4x64xf32>
    %45 = arith.addf %43, %44 : vector<4x64xf32>
    %cst_52 = arith.constant dense<0.000000e+00> : vector<4x64xf32>
    %46 = tpu.matmul %42, %1, %cst_52 {dimension_numbers = #tpu.dot_dimension_numbers<[1], [0], [0], [1], [0, 0, 1, 1], [], []>} : vector<4x16xf32>, vector<16x64xf32>, vector<4x64xf32> -> vector<4x64xf32>
    %47 = arith.addf %45, %46 : vector<4x64xf32>
    %c0_53 = arith.constant 0 : index
    %c0_54 = arith.constant 0 : index
    %c3_55 = arith.constant 3 : index
    %c0_56 = arith.constant 0 : index
    %48 = vector.load %arg7[%c0_53, %c0_54, %c3_55, %c0_56] : memref<1x4x16x64xf32, #tpu.memory_space<vmem>>, vector<1x4x1x64xf32>
    %49 = vector.shape_cast %48 : vector<1x4x1x64xf32> to vector<4x64xf32>
    %50 = vector.shape_cast %47 : vector<4x64xf32> to vector<1x4x1x64xf32>
    tpu.vector_store %arg7[%c0_53, %c0_54, %c3_55, %c0_56], %50 {strides = array<i32>} : memref<1x4x16x64xf32, #tpu.memory_space<vmem>>, vector<1x4x1x64xf32>,
    %c0_57 = arith.constant 0 : index
    %c0_58 = arith.constant 0 : index
    %c4 = arith.constant 4 : index
    %c0_59 = arith.constant 0 : index
    %51 = vector.load %arg3[%c0_57, %c0_58, %c4, %c0_59] : memref<1x6x16x64xf32, #tpu.memory_space<vmem>>, vector<1x6x1x64xf32>
    %52 = vector.shape_cast %51 : vector<1x6x1x64xf32> to vector<6x64xf32>
    %c0_60 = arith.constant 0 : index
    %c0_61 = arith.constant 0 : index
    %c4_62 = arith.constant 4 : index
    %c0_63 = arith.constant 0 : index
    %53 = vector.load %arg2[%c0_60, %c0_61, %c4_62, %c0_63] : memref<1x4x16x16xf32, #tpu.memory_space<vmem>>, vector<1x4x1x16xf32>
    %54 = vector.shape_cast %53 : vector<1x4x1x16xf32> to vector<4x16xf32>
    %cst_64 = arith.constant dense<0.000000e+00> : vector<4x64xf32>
    %55 = tpu.matmul %0, %52, %cst_64 {dimension_numbers = #tpu.dot_dimension_numbers<[1], [0], [0], [1], [0, 0, 1, 1], [], []>} : vector<4x6xf32>, vector<6x64xf32>, vector<4x64xf32> -> vector<4x64xf32>
    %56 = vector.broadcast %2 : vector<4x1xf32> to vector<4x64xf32>
    %57 = arith.addf %55, %56 : vector<4x64xf32>
    %cst_65 = arith.constant dense<0.000000e+00> : vector<4x64xf32>
    %58 = tpu.matmul %54, %1, %cst_65 {dimension_numbers = #tpu.dot_dimension_numbers<[1], [0], [0], [1], [0, 0, 1, 1], [], []>} : vector<4x16xf32>, vector<16x64xf32>, vector<4x64xf32> -> vector<4x64xf32>
    %59 = arith.addf %57, %58 : vector<4x64xf32>
    %c0_66 = arith.constant 0 : index
    %c0_67 = arith.constant 0 : index
    %c4_68 = arith.constant 4 : index
    %c0_69 = arith.constant 0 : index
    %60 = vector.load %arg7[%c0_66, %c0_67, %c4_68, %c0_69] : memref<1x4x16x64xf32, #tpu.memory_space<vmem>>, vector<1x4x1x64xf32>
    %61 = vector.shape_cast %60 : vector<1x4x1x64xf32> to vector<4x64xf32>
    %62 = vector.shape_cast %59 : vector<4x64xf32> to vector<1x4x1x64xf32>
    tpu.vector_store %arg7[%c0_66, %c0_67, %c4_68, %c0_69], %62 {strides = array<i32>} : memref<1x4x16x64xf32, #tpu.memory_space<vmem>>, vector<1x4x1x64xf32>,
    %c0_70 = arith.constant 0 : index
    %c0_71 = arith.constant 0 : index
    %c5 = arith.constant 5 : index
    %c0_72 = arith.constant 0 : index
    %63 = vector.load %arg3[%c0_70, %c0_71, %c5, %c0_72] : memref<1x6x16x64xf32, #tpu.memory_space<vmem>>, vector<1x6x1x64xf32>
    %64 = vector.shape_cast %63 : vector<1x6x1x64xf32> to vector<6x64xf32>
    %c0_73 = arith.constant 0 : index
    %c0_74 = arith.constant 0 : index
    %c5_75 = arith.constant 5 : index
    %c0_76 = arith.constant 0 : index
    %65 = vector.load %arg2[%c0_73, %c0_74, %c5_75, %c0_76] : memref<1x4x16x16xf32, #tpu.memory_space<vmem>>, vector<1x4x1x16xf32>
    %66 = vector.shape_cast %65 : vector<1x4x1x16xf32> to vector<4x16xf32>
    %cst_77 = arith.constant dense<0.000000e+00> : vector<4x64xf32>
    %67 = tpu.matmul %0, %64, %cst_77 {dimension_numbers = #tpu.dot_dimension_numbers<[1], [0], [0], [1], [0, 0, 1, 1], [], []>} : vector<4x6xf32>, vector<6x64xf32>, vector<4x64xf32> -> vector<4x64xf32>
    %68 = vector.broadcast %2 : vector<4x1xf32> to vector<4x64xf32>
    %69 = arith.addf %67, %68 : vector<4x64xf32>
    %cst_78 = arith.constant dense<0.000000e+00> : vector<4x64xf32>
    %70 = tpu.matmul %66, %1, %cst_78 {dimension_numbers = #tpu.dot_dimension_numbers<[1], [0], [0], [1], [0, 0, 1, 1], [], []>} : vector<4x16xf32>, vector<16x64xf32>, vector<4x64xf32> -> vector<4x64xf32>
    %71 = arith.addf %69, %70 : vector<4x64xf32>
    %c0_79 = arith.constant 0 : index
    %c0_80 = arith.constant 0 : index
    %c5_81 = arith.constant 5 : index
    %c0_82 = arith.constant 0 : index
    %72 = vector.load %arg7[%c0_79, %c0_80, %c5_81, %c0_82] : memref<1x4x16x64xf32, #tpu.memory_space<vmem>>, vector<1x4x1x64xf32>
    %73 = vector.shape_cast %72 : vector<1x4x1x64xf32> to vector<4x64xf32>
    %74 = vector.shape_cast %71 : vector<4x64xf32> to vector<1x4x1x64xf32>
    tpu.vector_store %arg7[%c0_79, %c0_80, %c5_81, %c0_82], %74 {strides = array<i32>} : memref<1x4x16x64xf32, #tpu.memory_space<vmem>>, vector<1x4x1x64xf32>,
    %c0_83 = arith.constant 0 : index
    %c0_84 = arith.constant 0 : index
    %c6 = arith.constant 6 : index
    %c0_85 = arith.constant 0 : index
    %75 = vector.load %arg3[%c0_83, %c0_84, %c6, %c0_85] : memref<1x6x16x64xf32, #tpu.memory_space<vmem>>, vector<1x6x1x64xf32>
    %76 = vector.shape_cast %75 : vector<1x6x1x64xf32> to vector<6x64xf32>
    %c0_86 = arith.constant 0 : index
    %c0_87 = arith.constant 0 : index
    %c6_88 = arith.constant 6 : index
    %c0_89 = arith.constant 0 : index
    %77 = vector.load %arg2[%c0_86, %c0_87, %c6_88, %c0_89] : memref<1x4x16x16xf32, #tpu.memory_space<vmem>>, vector<1x4x1x16xf32>
    %78 = vector.shape_cast %77 : vector<1x4x1x16xf32> to vector<4x16xf32>
    %cst_90 = arith.constant dense<0.000000e+00> : vector<4x64xf32>
    %79 = tpu.matmul %0, %76, %cst_90 {dimension_numbers = #tpu.dot_dimension_numbers<[1], [0], [0], [1], [0, 0, 1, 1], [], []>} : vector<4x6xf32>, vector<6x64xf32>, vector<4x64xf32> -> vector<4x64xf32>
    %80 = vector.broadcast %2 : vector<4x1xf32> to vector<4x64xf32>
    %81 = arith.addf %79, %80 : vector<4x64xf32>
    %cst_91 = arith.constant dense<0.000000e+00> : vector<4x64xf32>
    %82 = tpu.matmul %78, %1, %cst_91 {dimension_numbers = #tpu.dot_dimension_numbers<[1], [0], [0], [1], [0, 0, 1, 1], [], []>} : vector<4x16xf32>, vector<16x64xf32>, vector<4x64xf32> -> vector<4x64xf32>
    %83 = arith.addf %81, %82 : vector<4x64xf32>
    %c0_92 = arith.constant 0 : index
    %c0_93 = arith.constant 0 : index
    %c6_94 = arith.constant 6 : index
    %c0_95 = arith.constant 0 : index
    %84 = vector.load %arg7[%c0_92, %c0_93, %c6_94, %c0_95] : memref<1x4x16x64xf32, #tpu.memory_space<vmem>>, vector<1x4x1x64xf32>
    %85 = vector.shape_cast %84 : vector<1x4x1x64xf32> to vector<4x64xf32>
    %86 = vector.shape_cast %83 : vector<4x64xf32> to vector<1x4x1x64xf32>
    tpu.vector_store %arg7[%c0_92, %c0_93, %c6_94, %c0_95], %86 {strides = array<i32>} : memref<1x4x16x64xf32, #tpu.memory_space<vmem>>, vector<1x4x1x64xf32>,
    %c0_96 = arith.constant 0 : index
    %c0_97 = arith.constant 0 : index
    %c7 = arith.constant 7 : index
    %c0_98 = arith.constant 0 : index
    %87 = vector.load %arg3[%c0_96, %c0_97, %c7, %c0_98] : memref<1x6x16x64xf32, #tpu.memory_space<vmem>>, vector<1x6x1x64xf32>
    %88 = vector.shape_cast %87 : vector<1x6x1x64xf32> to vector<6x64xf32>
    %c0_99 = arith.constant 0 : index
    %c0_100 = arith.constant 0 : index
    %c7_101 = arith.constant 7 : index
    %c0_102 = arith.constant 0 : index
    %89 = vector.load %arg2[%c0_99, %c0_100, %c7_101, %c0_102] : memref<1x4x16x16xf32, #tpu.memory_space<vmem>>, vector<1x4x1x16xf32>
    %90 = vector.shape_cast %89 : vector<1x4x1x16xf32> to vector<4x16xf32>
    %cst_103 = arith.constant dense<0.000000e+00> : vector<4x64xf32>
    %91 = tpu.matmul %0, %88, %cst_103 {dimension_numbers = #tpu.dot_dimension_numbers<[1], [0], [0], [1], [0, 0, 1, 1], [], []>} : vector<4x6xf32>, vector<6x64xf32>, vector<4x64xf32> -> vector<4x64xf32>
    %92 = vector.broadcast %2 : vector<4x1xf32> to vector<4x64xf32>
    %93 = arith.addf %91, %92 : vector<4x64xf32>
    %cst_104 = arith.constant dense<0.000000e+00> : vector<4x64xf32>
    %94 = tpu.matmul %90, %1, %cst_104 {dimension_numbers = #tpu.dot_dimension_numbers<[1], [0], [0], [1], [0, 0, 1, 1], [], []>} : vector<4x16xf32>, vector<16x64xf32>, vector<4x64xf32> -> vector<4x64xf32>
    %95 = arith.addf %93, %94 : vector<4x64xf32>
    %c0_105 = arith.constant 0 : index
    %c0_106 = arith.constant 0 : index
    %c7_107 = arith.constant 7 : index
    %c0_108 = arith.constant 0 : index
    %96 = vector.load %arg7[%c0_105, %c0_106, %c7_107, %c0_108] : memref<1x4x16x64xf32, #tpu.memory_space<vmem>>, vector<1x4x1x64xf32>
    %97 = vector.shape_cast %96 : vector<1x4x1x64xf32> to vector<4x64xf32>
    %98 = vector.shape_cast %95 : vector<4x64xf32> to vector<1x4x1x64xf32>
    tpu.vector_store %arg7[%c0_105, %c0_106, %c7_107, %c0_108], %98 {strides = array<i32>} : memref<1x4x16x64xf32, #tpu.memory_space<vmem>>, vector<1x4x1x64xf32>,
    %c0_109 = arith.constant 0 : index
    %c0_110 = arith.constant 0 : index
    %c8 = arith.constant 8 : index
    %c0_111 = arith.constant 0 : index
    %99 = vector.load %arg3[%c0_109, %c0_110, %c8, %c0_111] : memref<1x6x16x64xf32, #tpu.memory_space<vmem>>, vector<1x6x1x64xf32>
    %100 = vector.shape_cast %99 : vector<1x6x1x64xf32> to vector<6x64xf32>
    %c0_112 = arith.constant 0 : index
    %c0_113 = arith.constant 0 : index
    %c8_114 = arith.constant 8 : index
    %c0_115 = arith.constant 0 : index
    %101 = vector.load %arg2[%c0_112, %c0_113, %c8_114, %c0_115] : memref<1x4x16x16xf32, #tpu.memory_space<vmem>>, vector<1x4x1x16xf32>
    %102 = vector.shape_cast %101 : vector<1x4x1x16xf32> to vector<4x16xf32>
    %cst_116 = arith.constant dense<0.000000e+00> : vector<4x64xf32>
    %103 = tpu.matmul %0, %100, %cst_116 {dimension_numbers = #tpu.dot_dimension_numbers<[1], [0], [0], [1], [0, 0, 1, 1], [], []>} : vector<4x6xf32>, vector<6x64xf32>, vector<4x64xf32> -> vector<4x64xf32>
    %104 = vector.broadcast %2 : vector<4x1xf32> to vector<4x64xf32>
    %105 = arith.addf %103, %104 : vector<4x64xf32>
    %cst_117 = arith.constant dense<0.000000e+00> : vector<4x64xf32>
    %106 = tpu.matmul %102, %1, %cst_117 {dimension_numbers = #tpu.dot_dimension_numbers<[1], [0], [0], [1], [0, 0, 1, 1], [], []>} : vector<4x16xf32>, vector<16x64xf32>, vector<4x64xf32> -> vector<4x64xf32>
    %107 = arith.addf %105, %106 : vector<4x64xf32>
    %c0_118 = arith.constant 0 : index
    %c0_119 = arith.constant 0 : index
    %c8_120 = arith.constant 8 : index
    %c0_121 = arith.constant 0 : index
    %108 = vector.load %arg7[%c0_118, %c0_119, %c8_120, %c0_121] : memref<1x4x16x64xf32, #tpu.memory_space<vmem>>, vector<1x4x1x64xf32>
    %109 = vector.shape_cast %108 : vector<1x4x1x64xf32> to vector<4x64xf32>
    %110 = vector.shape_cast %107 : vector<4x64xf32> to vector<1x4x1x64xf32>
    tpu.vector_store %arg7[%c0_118, %c0_119, %c8_120, %c0_121], %110 {strides = array<i32>} : memref<1x4x16x64xf32, #tpu.memory_space<vmem>>, vector<1x4x1x64xf32>,
    %c0_122 = arith.constant 0 : index
    %c0_123 = arith.constant 0 : index
    %c9 = arith.constant 9 : index
    %c0_124 = arith.constant 0 : index
    %111 = vector.load %arg3[%c0_122, %c0_123, %c9, %c0_124] : memref<1x6x16x64xf32, #tpu.memory_space<vmem>>, vector<1x6x1x64xf32>
    %112 = vector.shape_cast %111 : vector<1x6x1x64xf32> to vector<6x64xf32>
    %c0_125 = arith.constant 0 : index
    %c0_126 = arith.constant 0 : index
    %c9_127 = arith.constant 9 : index
    %c0_128 = arith.constant 0 : index
    %113 = vector.load %arg2[%c0_125, %c0_126, %c9_127, %c0_128] : memref<1x4x16x16xf32, #tpu.memory_space<vmem>>, vector<1x4x1x16xf32>
    %114 = vector.shape_cast %113 : vector<1x4x1x16xf32> to vector<4x16xf32>
    %cst_129 = arith.constant dense<0.000000e+00> : vector<4x64xf32>
    %115 = tpu.matmul %0, %112, %cst_129 {dimension_numbers = #tpu.dot_dimension_numbers<[1], [0], [0], [1], [0, 0, 1, 1], [], []>} : vector<4x6xf32>, vector<6x64xf32>, vector<4x64xf32> -> vector<4x64xf32>
    %116 = vector.broadcast %2 : vector<4x1xf32> to vector<4x64xf32>
    %117 = arith.addf %115, %116 : vector<4x64xf32>
    %cst_130 = arith.constant dense<0.000000e+00> : vector<4x64xf32>
    %118 = tpu.matmul %114, %1, %cst_130 {dimension_numbers = #tpu.dot_dimension_numbers<[1], [0], [0], [1], [0, 0, 1, 1], [], []>} : vector<4x16xf32>, vector<16x64xf32>, vector<4x64xf32> -> vector<4x64xf32>
    %119 = arith.addf %117, %118 : vector<4x64xf32>
    %c0_131 = arith.constant 0 : index
    %c0_132 = arith.constant 0 : index
    %c9_133 = arith.constant 9 : index
    %c0_134 = arith.constant 0 : index
    %120 = vector.load %arg7[%c0_131, %c0_132, %c9_133, %c0_134] : memref<1x4x16x64xf32, #tpu.memory_space<vmem>>, vector<1x4x1x64xf32>
    %121 = vector.shape_cast %120 : vector<1x4x1x64xf32> to vector<4x64xf32>
    %122 = vector.shape_cast %119 : vector<4x64xf32> to vector<1x4x1x64xf32>
    tpu.vector_store %arg7[%c0_131, %c0_132, %c9_133, %c0_134], %122 {strides = array<i32>} : memref<1x4x16x64xf32, #tpu.memory_space<vmem>>, vector<1x4x1x64xf32>,
    %c0_135 = arith.constant 0 : index
    %c0_136 = arith.constant 0 : index
    %c10 = arith.constant 10 : index
    %c0_137 = arith.constant 0 : index
    %123 = vector.load %arg3[%c0_135, %c0_136, %c10, %c0_137] : memref<1x6x16x64xf32, #tpu.memory_space<vmem>>, vector<1x6x1x64xf32>
    %124 = vector.shape_cast %123 : vector<1x6x1x64xf32> to vector<6x64xf32>
    %c0_138 = arith.constant 0 : index
    %c0_139 = arith.constant 0 : index
    %c10_140 = arith.constant 10 : index
    %c0_141 = arith.constant 0 : index
    %125 = vector.load %arg2[%c0_138, %c0_139, %c10_140, %c0_141] : memref<1x4x16x16xf32, #tpu.memory_space<vmem>>, vector<1x4x1x16xf32>
    %126 = vector.shape_cast %125 : vector<1x4x1x16xf32> to vector<4x16xf32>
    %cst_142 = arith.constant dense<0.000000e+00> : vector<4x64xf32>
    %127 = tpu.matmul %0, %124, %cst_142 {dimension_numbers = #tpu.dot_dimension_numbers<[1], [0], [0], [1], [0, 0, 1, 1], [], []>} : vector<4x6xf32>, vector<6x64xf32>, vector<4x64xf32> -> vector<4x64xf32>
    %128 = vector.broadcast %2 : vector<4x1xf32> to vector<4x64xf32>
    %129 = arith.addf %127, %128 : vector<4x64xf32>
    %cst_143 = arith.constant dense<0.000000e+00> : vector<4x64xf32>
    %130 = tpu.matmul %126, %1, %cst_143 {dimension_numbers = #tpu.dot_dimension_numbers<[1], [0], [0], [1], [0, 0, 1, 1], [], []>} : vector<4x16xf32>, vector<16x64xf32>, vector<4x64xf32> -> vector<4x64xf32>
    %131 = arith.addf %129, %130 : vector<4x64xf32>
    %c0_144 = arith.constant 0 : index
    %c0_145 = arith.constant 0 : index
    %c10_146 = arith.constant 10 : index
    %c0_147 = arith.constant 0 : index
    %132 = vector.load %arg7[%c0_144, %c0_145, %c10_146, %c0_147] : memref<1x4x16x64xf32, #tpu.memory_space<vmem>>, vector<1x4x1x64xf32>
    %133 = vector.shape_cast %132 : vector<1x4x1x64xf32> to vector<4x64xf32>
    %134 = vector.shape_cast %131 : vector<4x64xf32> to vector<1x4x1x64xf32>
    tpu.vector_store %arg7[%c0_144, %c0_145, %c10_146, %c0_147], %134 {strides = array<i32>} : memref<1x4x16x64xf32, #tpu.memory_space<vmem>>, vector<1x4x1x64xf32>,
    %c0_148 = arith.constant 0 : index
    %c0_149 = arith.constant 0 : index
    %c11 = arith.constant 11 : index
    %c0_150 = arith.constant 0 : index
    %135 = vector.load %arg3[%c0_148, %c0_149, %c11, %c0_150] : memref<1x6x16x64xf32, #tpu.memory_space<vmem>>, vector<1x6x1x64xf32>
    %136 = vector.shape_cast %135 : vector<1x6x1x64xf32> to vector<6x64xf32>
    %c0_151 = arith.constant 0 : index
    %c0_152 = arith.constant 0 : index
    %c11_153 = arith.constant 11 : index
    %c0_154 = arith.constant 0 : index
    %137 = vector.load %arg2[%c0_151, %c0_152, %c11_153, %c0_154] : memref<1x4x16x16xf32, #tpu.memory_space<vmem>>, vector<1x4x1x16xf32>
    %138 = vector.shape_cast %137 : vector<1x4x1x16xf32> to vector<4x16xf32>
    %cst_155 = arith.constant dense<0.000000e+00> : vector<4x64xf32>
    %139 = tpu.matmul %0, %136, %cst_155 {dimension_numbers = #tpu.dot_dimension_numbers<[1], [0], [0], [1], [0, 0, 1, 1], [], []>} : vector<4x6xf32>, vector<6x64xf32>, vector<4x64xf32> -> vector<4x64xf32>
    %140 = vector.broadcast %2 : vector<4x1xf32> to vector<4x64xf32>
    %141 = arith.addf %139, %140 : vector<4x64xf32>
    %cst_156 = arith.constant dense<0.000000e+00> : vector<4x64xf32>
    %142 = tpu.matmul %138, %1, %cst_156 {dimension_numbers = #tpu.dot_dimension_numbers<[1], [0], [0], [1], [0, 0, 1, 1], [], []>} : vector<4x16xf32>, vector<16x64xf32>, vector<4x64xf32> -> vector<4x64xf32>
    %143 = arith.addf %141, %142 : vector<4x64xf32>
    %c0_157 = arith.constant 0 : index
    %c0_158 = arith.constant 0 : index
    %c11_159 = arith.constant 11 : index
    %c0_160 = arith.constant 0 : index
    %144 = vector.load %arg7[%c0_157, %c0_158, %c11_159, %c0_160] : memref<1x4x16x64xf32, #tpu.memory_space<vmem>>, vector<1x4x1x64xf32>
    %145 = vector.shape_cast %144 : vector<1x4x1x64xf32> to vector<4x64xf32>
    %146 = vector.shape_cast %143 : vector<4x64xf32> to vector<1x4x1x64xf32>
    tpu.vector_store %arg7[%c0_157, %c0_158, %c11_159, %c0_160], %146 {strides = array<i32>} : memref<1x4x16x64xf32, #tpu.memory_space<vmem>>, vector<1x4x1x64xf32>,
    %c0_161 = arith.constant 0 : index
    %c0_162 = arith.constant 0 : index
    %c12 = arith.constant 12 : index
    %c0_163 = arith.constant 0 : index
    %147 = vector.load %arg3[%c0_161, %c0_162, %c12, %c0_163] : memref<1x6x16x64xf32, #tpu.memory_space<vmem>>, vector<1x6x1x64xf32>
    %148 = vector.shape_cast %147 : vector<1x6x1x64xf32> to vector<6x64xf32>
    %c0_164 = arith.constant 0 : index
    %c0_165 = arith.constant 0 : index
    %c12_166 = arith.constant 12 : index
    %c0_167 = arith.constant 0 : index
    %149 = vector.load %arg2[%c0_164, %c0_165, %c12_166, %c0_167] : memref<1x4x16x16xf32, #tpu.memory_space<vmem>>, vector<1x4x1x16xf32>
    %150 = vector.shape_cast %149 : vector<1x4x1x16xf32> to vector<4x16xf32>
    %cst_168 = arith.constant dense<0.000000e+00> : vector<4x64xf32>
    %151 = tpu.matmul %0, %148, %cst_168 {dimension_numbers = #tpu.dot_dimension_numbers<[1], [0], [0], [1], [0, 0, 1, 1], [], []>} : vector<4x6xf32>, vector<6x64xf32>, vector<4x64xf32> -> vector<4x64xf32>
    %152 = vector.broadcast %2 : vector<4x1xf32> to vector<4x64xf32>
    %153 = arith.addf %151, %152 : vector<4x64xf32>
    %cst_169 = arith.constant dense<0.000000e+00> : vector<4x64xf32>
    %154 = tpu.matmul %150, %1, %cst_169 {dimension_numbers = #tpu.dot_dimension_numbers<[1], [0], [0], [1], [0, 0, 1, 1], [], []>} : vector<4x16xf32>, vector<16x64xf32>, vector<4x64xf32> -> vector<4x64xf32>
    %155 = arith.addf %153, %154 : vector<4x64xf32>
    %c0_170 = arith.constant 0 : index
    %c0_171 = arith.constant 0 : index
    %c12_172 = arith.constant 12 : index
    %c0_173 = arith.constant 0 : index
    %156 = vector.load %arg7[%c0_170, %c0_171, %c12_172, %c0_173] : memref<1x4x16x64xf32, #tpu.memory_space<vmem>>, vector<1x4x1x64xf32>
    %157 = vector.shape_cast %156 : vector<1x4x1x64xf32> to vector<4x64xf32>
    %158 = vector.shape_cast %155 : vector<4x64xf32> to vector<1x4x1x64xf32>
    tpu.vector_store %arg7[%c0_170, %c0_171, %c12_172, %c0_173], %158 {strides = array<i32>} : memref<1x4x16x64xf32, #tpu.memory_space<vmem>>, vector<1x4x1x64xf32>,
    %c0_174 = arith.constant 0 : index
    %c0_175 = arith.constant 0 : index
    %c13 = arith.constant 13 : index
    %c0_176 = arith.constant 0 : index
    %159 = vector.load %arg3[%c0_174, %c0_175, %c13, %c0_176] : memref<1x6x16x64xf32, #tpu.memory_space<vmem>>, vector<1x6x1x64xf32>
    %160 = vector.shape_cast %159 : vector<1x6x1x64xf32> to vector<6x64xf32>
    %c0_177 = arith.constant 0 : index
    %c0_178 = arith.constant 0 : index
    %c13_179 = arith.constant 13 : index
    %c0_180 = arith.constant 0 : index
    %161 = vector.load %arg2[%c0_177, %c0_178, %c13_179, %c0_180] : memref<1x4x16x16xf32, #tpu.memory_space<vmem>>, vector<1x4x1x16xf32>
    %162 = vector.shape_cast %161 : vector<1x4x1x16xf32> to vector<4x16xf32>
    %cst_181 = arith.constant dense<0.000000e+00> : vector<4x64xf32>
    %163 = tpu.matmul %0, %160, %cst_181 {dimension_numbers = #tpu.dot_dimension_numbers<[1], [0], [0], [1], [0, 0, 1, 1], [], []>} : vector<4x6xf32>, vector<6x64xf32>, vector<4x64xf32> -> vector<4x64xf32>
    %164 = vector.broadcast %2 : vector<4x1xf32> to vector<4x64xf32>
    %165 = arith.addf %163, %164 : vector<4x64xf32>
    %cst_182 = arith.constant dense<0.000000e+00> : vector<4x64xf32>
    %166 = tpu.matmul %162, %1, %cst_182 {dimension_numbers = #tpu.dot_dimension_numbers<[1], [0], [0], [1], [0, 0, 1, 1], [], []>} : vector<4x16xf32>, vector<16x64xf32>, vector<4x64xf32> -> vector<4x64xf32>
    %167 = arith.addf %165, %166 : vector<4x64xf32>
    %c0_183 = arith.constant 0 : index
    %c0_184 = arith.constant 0 : index
    %c13_185 = arith.constant 13 : index
    %c0_186 = arith.constant 0 : index
    %168 = vector.load %arg7[%c0_183, %c0_184, %c13_185, %c0_186] : memref<1x4x16x64xf32, #tpu.memory_space<vmem>>, vector<1x4x1x64xf32>
    %169 = vector.shape_cast %168 : vector<1x4x1x64xf32> to vector<4x64xf32>
    %170 = vector.shape_cast %167 : vector<4x64xf32> to vector<1x4x1x64xf32>
    tpu.vector_store %arg7[%c0_183, %c0_184, %c13_185, %c0_186], %170 {strides = array<i32>} : memref<1x4x16x64xf32, #tpu.memory_space<vmem>>, vector<1x4x1x64xf32>,
    %c0_187 = arith.constant 0 : index
    %c0_188 = arith.constant 0 : index
    %c14 = arith.constant 14 : index
    %c0_189 = arith.constant 0 : index
    %171 = vector.load %arg3[%c0_187, %c0_188, %c14, %c0_189] : memref<1x6x16x64xf32, #tpu.memory_space<vmem>>, vector<1x6x1x64xf32>
    %172 = vector.shape_cast %171 : vector<1x6x1x64xf32> to vector<6x64xf32>
    %c0_190 = arith.constant 0 : index
    %c0_191 = arith.constant 0 : index
    %c14_192 = arith.constant 14 : index
    %c0_193 = arith.constant 0 : index
    %173 = vector.load %arg2[%c0_190, %c0_191, %c14_192, %c0_193] : memref<1x4x16x16xf32, #tpu.memory_space<vmem>>, vector<1x4x1x16xf32>
    %174 = vector.shape_cast %173 : vector<1x4x1x16xf32> to vector<4x16xf32>
    %cst_194 = arith.constant dense<0.000000e+00> : vector<4x64xf32>
    %175 = tpu.matmul %0, %172, %cst_194 {dimension_numbers = #tpu.dot_dimension_numbers<[1], [0], [0], [1], [0, 0, 1, 1], [], []>} : vector<4x6xf32>, vector<6x64xf32>, vector<4x64xf32> -> vector<4x64xf32>
    %176 = vector.broadcast %2 : vector<4x1xf32> to vector<4x64xf32>
    %177 = arith.addf %175, %176 : vector<4x64xf32>
    %cst_195 = arith.constant dense<0.000000e+00> : vector<4x64xf32>
    %178 = tpu.matmul %174, %1, %cst_195 {dimension_numbers = #tpu.dot_dimension_numbers<[1], [0], [0], [1], [0, 0, 1, 1], [], []>} : vector<4x16xf32>, vector<16x64xf32>, vector<4x64xf32> -> vector<4x64xf32>
    %179 = arith.addf %177, %178 : vector<4x64xf32>
    %c0_196 = arith.constant 0 : index
    %c0_197 = arith.constant 0 : index
    %c14_198 = arith.constant 14 : index
    %c0_199 = arith.constant 0 : index
    %180 = vector.load %arg7[%c0_196, %c0_197, %c14_198, %c0_199] : memref<1x4x16x64xf32, #tpu.memory_space<vmem>>, vector<1x4x1x64xf32>
    %181 = vector.shape_cast %180 : vector<1x4x1x64xf32> to vector<4x64xf32>
    %182 = vector.shape_cast %179 : vector<4x64xf32> to vector<1x4x1x64xf32>
    tpu.vector_store %arg7[%c0_196, %c0_197, %c14_198, %c0_199], %182 {strides = array<i32>} : memref<1x4x16x64xf32, #tpu.memory_space<vmem>>, vector<1x4x1x64xf32>,
    %c0_200 = arith.constant 0 : index
    %c0_201 = arith.constant 0 : index
    %c15 = arith.constant 15 : index
    %c0_202 = arith.constant 0 : index
    %183 = vector.load %arg3[%c0_200, %c0_201, %c15, %c0_202] : memref<1x6x16x64xf32, #tpu.memory_space<vmem>>, vector<1x6x1x64xf32>
    %184 = vector.shape_cast %183 : vector<1x6x1x64xf32> to vector<6x64xf32>
    %c0_203 = arith.constant 0 : index
    %c0_204 = arith.constant 0 : index
    %c15_205 = arith.constant 15 : index
    %c0_206 = arith.constant 0 : index
    %185 = vector.load %arg2[%c0_203, %c0_204, %c15_205, %c0_206] : memref<1x4x16x16xf32, #tpu.memory_space<vmem>>, vector<1x4x1x16xf32>
    %186 = vector.shape_cast %185 : vector<1x4x1x16xf32> to vector<4x16xf32>
    %cst_207 = arith.constant dense<0.000000e+00> : vector<4x64xf32>
    %187 = tpu.matmul %0, %184, %cst_207 {dimension_numbers = #tpu.dot_dimension_numbers<[1], [0], [0], [1], [0, 0, 1, 1], [], []>} : vector<4x6xf32>, vector<6x64xf32>, vector<4x64xf32> -> vector<4x64xf32>
    %188 = vector.broadcast %2 : vector<4x1xf32> to vector<4x64xf32>
    %189 = arith.addf %187, %188 : vector<4x64xf32>
    %cst_208 = arith.constant dense<0.000000e+00> : vector<4x64xf32>
    %190 = tpu.matmul %186, %1, %cst_208 {dimension_numbers = #tpu.dot_dimension_numbers<[1], [0], [0], [1], [0, 0, 1, 1], [], []>} : vector<4x16xf32>, vector<16x64xf32>, vector<4x64xf32> -> vector<4x64xf32>
    %191 = arith.addf %189, %190 : vector<4x64xf32>
    %c0_209 = arith.constant 0 : index
    %c0_210 = arith.constant 0 : index
    %c15_211 = arith.constant 15 : index
    %c0_212 = arith.constant 0 : index
    %192 = vector.load %arg7[%c0_209, %c0_210, %c15_211, %c0_212] : memref<1x4x16x64xf32, #tpu.memory_space<vmem>>, vector<1x4x1x64xf32>
    %193 = vector.shape_cast %192 : vector<1x4x1x64xf32> to vector<4x64xf32>
    %194 = vector.shape_cast %191 : vector<4x64xf32> to vector<1x4x1x64xf32>
    tpu.vector_store %arg7[%c0_209, %c0_210, %c15_211, %c0_212], %194 {strides = array<i32>} : memref<1x4x16x64xf32, #tpu.memory_space<vmem>>, vector<1x4x1x64xf32>,
    return
  }
  func.func @transform_0(%arg0: i32, %arg1: i32) -> (i32, i32, i32, i32) {
    %c0_i32 = arith.constant 0 : i32
    %c0_i32_0 = arith.constant 0 : i32
    %c0_i32_1 = arith.constant 0 : i32
    return %arg0, %c0_i32, %arg1, %c0_i32_0 : i32, i32, i32, i32
  }
  func.func @transform_1(%arg0: i32, %arg1: i32) -> (i32, i32, i32, i32) {
    %c0_i32 = arith.constant 0 : i32
    %c0_i32_0 = arith.constant 0 : i32
    %c0_i32_1 = arith.constant 0 : i32
    return %arg0, %c0_i32, %arg1, %c0_i32_0 : i32, i32, i32, i32
  }
  func.func @transform_2(%arg0: i32, %arg1: i32) -> (i32, i32) {
    %c0_i32 = arith.constant 0 : i32
    %c0_i32_0 = arith.constant 0 : i32
    %c0_i32_1 = arith.constant 0 : i32
    return %c0_i32, %c0_i32_0 : i32, i32
  }
  func.func @transform_3(%arg0: i32, %arg1: i32) -> (i32, i32) {
    %c0_i32 = arith.constant 0 : i32
    %c0_i32_0 = arith.constant 0 : i32
    %c0_i32_1 = arith.constant 0 : i32
    return %c0_i32, %c0_i32_0 : i32, i32
  }
  func.func @transform_4(%arg0: i32, %arg1: i32) -> (i32, i32) {
    %c0_i32 = arith.constant 0 : i32
    %c0_i32_0 = arith.constant 0 : i32
    %c0_i32_1 = arith.constant 0 : i32
    return %c0_i32, %c0_i32_0 : i32, i32
  }
  func.func @transform_5(%arg0: i32, %arg1: i32) -> (i32, i32, i32, i32) {
    %c0_i32 = arith.constant 0 : i32
    %c0_i32_0 = arith.constant 0 : i32
    %c0_i32_1 = arith.constant 0 : i32
    return %arg0, %c0_i32, %arg1, %c0_i32_0 : i32, i32, i32, i32
  }
}

</mosaic_0001>

<bundles_post_ra>
// kernel: tpu_custom_call.1
= control target key start
LH: loop header
LB: loop body
LE: loop exit
PB: predicated region body
PF: predicated region fallthrough
CT: control target
= control target key end

     0   :  { %s3052_s0 = inlined_call_operand.hbm [shape: f32[2,4,16,16], index: 0, kind: input, shape index: {}]   ;;  %s3053_s1 = inlined_call_operand.hbm [shape: f32[2,6,16,64], index: 1, kind: input, shape index: {}]   ;;  %s3054_s2 = inlined_call_operand.vmem [shape: f32[4,6], index: 2, kind: input, shape index: {}]   ;;  %s3055_s3 = inlined_call_operand.vmem [shape: f32[4,1], index: 3, kind: input, shape index: {}]   ;;  %s3056_s4 = inlined_call_operand.hbm [shape: f32[16,64], index: 4, kind: input, shape index: {}]   ;;  %s3057_s5 = inlined_call_operand.hbm [shape: f32[2,4,16,64], index: 5, kind: output, shape index: {}]  }
   0x1   :  { %3068 = sst [smem:[#allocation19_spill]] %s3056_s4 }
   0x2   :  { %10 = vsyncpa [#allocation3], 0 }
   0x3   :  { %12 = vsyncpa [#allocation3 + $0x1], 0 }
   0x4   :  { %13 = vsyncpa [#allocation6], 0 }
   0x5   :  { %15 = vsyncpa [#allocation6 + $0x1], 0 }
   0x6   :  { %16 = vsyncpa [#allocation4], 0 }
   0x7   :  { %18 = vsyncpa [#allocation4 + $0x1], 0  ;;  %s2334_s18 = smov 0   ;;  %s2336_s19 = smov 0  }
   0x8   :  { %s2338_s20 = smov 0   ;;  %s2340_s21 = smov 0  }
   0x9   :  { %s2342_s22 = smov 0   ;;  %s2344_s23 = smov 0  }
   0xa LB: > { %3069 = sst [smem:[#allocation13_spill]] %s2276_s18  ;;  %s2365_s24 = sadd.s32 4294967295, %s2296_s23   ;;  %s2296_s23 = sphi %s2344_s23, %s24_s23   ;;  %s2292_s22 = sphi %s2342_s22, %s3092_s22   ;;  %s2288_s21 = sphi %s2340_s21, %s3091_s21   ;;  %s2284_s20 = sphi %s2338_s20, %s3087_s20   ;;  %s2280_s19 = sphi %s2336_s19, %s3090_s19   ;;  %s2276_s18 = sphi %s2334_s18, %s3089_s18  }
   0xb   : > { %3070 = sst [smem:[#allocation14_spill]] %s2284_s20  ;;  %s1962_s25 = sadd.s32 4294967294, %s2296_s23  }
   0xc   : > { %p58_p0 = scmp.ne.s32.totalorder %s2280_s19, %s2276_s18  ;;  %p59_p1 = scmp.eq.s32.totalorder %s2365_s24, 0 }
   0xd   : > { %p175_p2 = scmp.eq.s32.totalorder %s2365_s24, 1  ;;  %p181_p3 = scmp.eq.s32.totalorder %s1962_s25, 1 }
   0xe   : > { %p2374_p4 = por %p59_p1, %p58_p0  ;;  %p1963_p5 = scmp.ge.s32.totalorder %s2296_s23, 1 }
   0xf   : > { %p2379_p6 = por %p181_p3, %p58_p0  ;;  %p188_p7 = scmp.lt.s32.totalorder %s2296_s23, 3 }
  0x10   : > { %s3074_s4 = sld [smem:[#allocation19_spill]]  ;;  %s2298_s7 = smov [#allocation7]  }
  0x11   : > { %s3072_s27 = scalar_select %p2379_p6, 1, 0 }
  0x12   : > { %p2387_p8 = pnand %p1963_p5, %p188_p7  ;;  %s207_s8 = sshll.u32 %s2298_s7, 4  ;;  %s208_s8 = int_to_ptr.vmem [resolvable:$true] %s207_s8 }
  0x13   : > { %3073 = sst [smem:[#allocation15_spill]] %s3072_s27  ;;  %p1965_p11 = scmp.ge.s32.totalorder %s2296_s23, 2 }
  0x14   : > { %p2042_p9 = pneg %p2387_p8  ;;  %s3058_s9 = smov 128  }
  0x15   : > { %s3060_s10 = smov 8   ;;  %s36_s11 = sadd.s32 1, %s2292_s22 }
  0x16   : > { %s205_s30 = sshll.u32 %s3074_s4, 4  ;;  %p2043_p10 = pnand %p2042_p9, %p59_p1  ;;  %s206_s30 = int_to_ptr.hbm [resolvable:$true] %s205_s30 }
  0x17   : > { %p38_p12 = scmp.ge.s32.totalorder %s36_s11, 2  ;;  %s45_s12 = sadd.s32 1, %s2284_s20 }
  0x18   : > { %2045 = dma.hbm_to_vmem [thread:$0]  (!%p2043_p10), %s206_s30, 256, %s208_s8, [#allocation6], %s3058_s9, %s3058_s9, %s3060_s10  }
  0x19   : > { %p52_p13 = scmp.ne.s32.totalorder %s2284_s20, %s2280_s19  ;;  %p53_p0 = scmp.eq.s32.totalorder %s2296_s23, 0 }
  0x1a   : > { %s3094_s11 = smov (%p38_p12, %s36_s11), 0  ;;  %p2058_p7 = scmp.lt.s32.totalorder %s2296_s23, 2 }
  0x1b   : > { %3076 = sst [smem:[#allocation16_spill]] %s3094_s11  ;;  %p2406_p3 = por %p53_p0, %p52_p13 }
  0x1c   : > { %p2412_p5 = por %p175_p2, %p52_p13  ;;  %s40_s15 = ssub.s32 %s2292_s22, %s3094_s11 }
  0x1d   : > { %p43_p9 = scmp.eq.s32.totalorder %s40_s15, 0  ;;  %s221_s16 = sand.u32 1, %s2284_s20  }
  0x1e   : > { %s3078_s14 = scalar_select %p2412_p5, 1, 0 }
  0x1f   : > { %s1966_s17 = sshll.u32 %s221_s16, 6  ;;  %s2027_s28 = sshll.u32 %s2292_s22, 6 }
  0x20   : > { %3079 = sst [smem:[#allocation17_spill]] %s3078_s14  ;;  %s232_s7 = scalar_lea.hbm %s3052_s0, %s2027_s28 }
  0x21   : > { %s2421_s25 = scalar_select %p43_p9, %s2284_s20, %s45_s12  }
  0x22   : > { %s225_s8 = scalar_lea.vmem [#allocation2], %s1966_s17  ;;  %s233_s10 = sshll.u32 %s232_s7, 4  ;;  %s234_s10 = int_to_ptr.hbm [resolvable:$true] %s233_s10 }
  0x23   : > { %3080 = sst [smem:[#allocation18_spill]] %s2421_s25  ;;  %s235_s9 = sshll.u32 %s225_s8, 4  ;;  %s236_s9 = int_to_ptr.vmem [resolvable:$true] %s235_s9 }
  0x24   : > { %p2047_p2 = pnand %p2058_p7, %p2406_p3  ;;  %s2029_s4 = smul.u32 96, %s221_s16 }
  0x25   : > { %s245_s11 = sand.u32 1, %s2296_s23   ;;  %s222_s15 = scalar_lea.sflag [#allocation3], %s221_s16 }
  0x26   : > { %s3081_s27 = smov 8   ;;  %s3082_s18 = smov 128  }
  0x27   : > { %2049 = dma.hbm_to_vmem [thread:$0]  (!%p2047_p2), %s234_s10, 1024, %s236_s9, %s222_s15, %s3082_s18, %s3082_s18, %s3081_s27  }
  0x28   : > { %s2030_s12 = smul.u32 96, %s2292_s22  ;;  %s249_s25 = scalar_lea.vmem [#allocation5], %s2029_s4 }
  0x29   : > { %s259_s20 = sshll.u32 %s249_s25, 4  ;;  %s246_s30 = scalar_lea.sflag [#allocation6], %s245_s11  ;;  %s260_s20 = int_to_ptr.vmem [resolvable:$true] %s259_s20 }
  0x2a   : > { %s256_s17 = scalar_lea.hbm %s3053_s1, %s2030_s12  ;;  %271 = sbr.rel (%p2387_p8) target bundleno = 285 (0x11d), region = 40 }
  0x2b   : > { %s257_s28 = sshll.u32 %s256_s17, 4  ;;  %s2443_s9 = sand.u32 (!%p2387_p8), 1, %s2280_s19   ;;  %s258_s28 = int_to_ptr.hbm [resolvable:$true] %s257_s28 }
  0x2c   : > { %2052 = dma.hbm_to_vmem [thread:$0]  (!%p2047_p2), %s258_s28, 1536, %s260_s20, %s246_s30, %s3082_s18, %s3082_s18, %s3081_s27  }
  0x2d   : > { %s1971_s4 = sshll.u32 (!%p2387_p8), %s2443_s9, 6  ;;  %s274_s10 = scalar_lea.sflag (!%p2387_p8), [#allocation3], %s2443_s9 }
  0x2e   : > { %s2449_s13 = scalar_lea.vmem (!%p2387_p8), [#allocation2], %s1971_s4 }
  0x2f   : > { %2259 = dma.done.wait (%p2374_p4), %s274_s10, 1024  }
  0x30   : > { %2261 = vsyncadd (%p2374_p4), %s274_s10, 4294966272  ;;  %s283_s18 = sand.u32 1, %s2365_s24   ;;  %s2031_s20 = smul.u32 96, %s2443_s9 }
  0x31   : > { %s284_s27 = scalar_lea.sflag [#allocation6], %s283_s18 }
  0x32   : > { %s2457_s6 = scalar_lea.vmem [#allocation5], %s2031_s20 }
  0x33   : > { %2263 = dma.done.wait (%p2374_p4), %s284_s27, 1536  }
  0x34   : > { %2265 = vsyncadd (%p2374_p4), %s284_s27, 4294965760 }
  0x35   : > { %2267 = dma.done.wait (%p59_p1), [#allocation6], 256  }
  0x36   : > { %2269 = vsyncadd (%p59_p1), [#allocation6], 4294967040  ;;  %v2301_v0 = vmov 0   ;;  %vm354_vm0 = vcmask 1041409   ;;  %vm357_vm1 = vcmask 1042434   ;;  %vm360_vm2 = vcmask 1043459  }
  0x37   : > { %2115 = vset.pattern.permute.xlu0 %v2301_v0  ;;  %vm363_vm3 = vcmask 1044484   ;;  %vm366_vm4 = vcmask 1045509   ;;  %v2467_v1 = vld [vmem:[#allocation7 + $0x8] sm:$0xff]  ;;  %vm372_vm5 = vcmask 1045504   ;;  %v441_v2 = vld [vmem:[%s2457_s6 + $0x1] sm:$0x1] }
  0x38   : > { %v442_v3 = vld [vmem:[%s2457_s6 + $0x11] sm:$0x1]  ;;  %515 = vmatpush.msra.mxu3 %v2467_v1  ;;  %v443_v4 = vld [vmem:[%s2457_s6 + $0x21] sm:$0x1]  ;;  %422 = vmatpush.msra.mxu1 %v2467_v1  ;;  %vm368_vm6 = vcmask 48128   ;;  %vm405_vm7 = vcmask 130048  }
  0x39   : > { %v444_v5 = vld [vmem:[%s2457_s6 + $0x31] sm:$0x1]  ;;  %v445_v6 = vld [vmem:[%s2457_s6 + $0x41] sm:$0x1]  ;;  %v457_v8 = vrot.slane %v442_v3, 7  ;;  %v459_v9 = vrot.slane %v443_v4, 6 }
  0x3a   : > { %v446_v7 = vld [vmem:[%s2457_s6 + $0x51] sm:$0x1]  ;;  %v461_v10 = vrot.slane %v444_v5, 5  ;;  %v463_v11 = vrot.slane %v445_v6, 4  ;;  %v2477_v13 = vld [vmem:[#allocation7] sm:$0xff]  ;;  %vm436_vm8 = vcmask 516096  }
  0x3b   : > { %v465_v12 = vrot.slane %v446_v7, 3  ;;  %v447_v14 = vld [vmem:[%s2449_s13 + $0x1] sm:$0x1]  ;;  %v458_v15 = vsel %vm354_vm0, %v457_v8, %v441_v2  ;;  %516 = vmatpush.msra.mxu3 %v2477_v13  ;;  %v448_v16 = vld [vmem:[%s2449_s13 + $0x11] sm:$0x1]  ;;  %423 = vmatpush.msra.mxu1 %v2477_v13  ;;  %s2869_s16 = scalar_lea.vmem [#allocation8], %s1971_s4 }
  0x3c   : > { %v449_v17 = vld [vmem:[%s2449_s13 + $0x21] sm:$0x1]  ;;  %v450_v18 = vld [vmem:[%s2449_s13 + $0x31] sm:$0x1]  ;;  %v460_v19 = vsel %vm357_vm1, %v459_v9, %v458_v15  ;;  %v493_v21 = vrot.slane %v448_v16, 7  ;;  %s2028_s25 = sshll.u32 %s2288_s21, 6 }
  0x3d   : > { %v2490_v20 = vld [vmem:[%s3054_s2] sm:$0xf]  ;;  %v495_v22 = vrot.slane %v449_v17, 6  ;;  %v497_v23 = vrot.slane %v450_v18, 5  ;;  %699 = vmatpush.msrb.mxu3 %v2467_v1  ;;  %v462_v25 = vsel %vm360_vm2, %v461_v10, %v460_v19  ;;  %v333_v26 = vld [vmem:[%s2457_s6 + $0x10] sm:$0x1]  ;;  %s1835_s15 = scalar_lea.hbm %s3057_s5, %s2028_s25 }
  0x3e   : > { %v332_v24 = vld [vmem:[%s2457_s6] sm:$0x1]  ;;  %v335_v28 = vld [vmem:[%s2457_s6 + $0x30] sm:$0x1]  ;;  %v464_v29 = vsel %vm363_vm3, %v463_v11, %v462_v25  ;;  %v494_v30 = vsel %vm354_vm0, %v493_v21, %v447_v14  ;;  %v353_v33 = vrot.slane %v333_v26, 7  ;;  %s1836_s21 = sshll.u32 %s2869_s16, 4  ;;  %s1837_s21 = int_to_ptr.vmem [resolvable:$true] %s1836_s21 }
  0x3f   : > { %v334_v27 = vld [vmem:[%s2457_s6 + $0x20] sm:$0x1]  ;;  %v337_v32 = vld [vmem:[%s2457_s6 + $0x50] sm:$0x1]  ;;  %700 = vmatpush.msrb.mxu3 %v2477_v13  ;;  %v466_v35 = vsel %vm366_vm4, %v465_v12, %v464_v29  ;;  %v496_v36 = vsel %vm357_vm1, %v495_v22, %v494_v30  ;;  %v359_v37 = vrot.slane %v335_v28, 5  ;;  %s1838_s12 = sshll.u32 %s1835_s15, 4  ;;  %s1839_s12 = int_to_ptr.hbm [resolvable:$true] %s1838_s12 }
  0x40   : > { %v336_v31 = vld [vmem:[%s2457_s6 + $0x40] sm:$0x1]  ;;  %v356_v34 = vrot.slane %v334_v27, 6  ;;  %v339_v40 = vld [vmem:[%s2449_s13 + $0x10] sm:$0x1]  ;;  %1977 = vmatpush.msk.msra.mxu2 %vm372_vm5, %v466_v35  ;;  %v498_v41 = vsel %vm360_vm2, %v497_v23, %v496_v36  ;;  %v355_v42 = vsel %vm354_vm0, %v353_v33, %v332_v24  ;;  %v365_v43 = vrot.slane %v337_v32, 3 }
  0x41   : > { %v362_v38 = vrot.slane %v336_v31, 4  ;;  %v338_v39 = vld [vmem:[%s2449_s13] sm:$0x1]  ;;  %v341_v45 = vld [vmem:[%s2449_s13 + $0x30] sm:$0x1]  ;;  %v399_v46 = vrot.slane %v339_v40, 7  ;;  %1978 = vmatmul.msk.f32.vlgmr.msra.gmra.mxu2 %vm368_vm6, %v2490_v20  ;;  %1979 = vmatmul.msk.f32.vlgmr.msra.gmra.mxu3 %vm405_vm7, %v498_v41 }
  0x42   : > { %v340_v44 = vld [vmem:[%s2449_s13 + $0x20] sm:$0x1]  ;;  %v358_v47 = vsel %vm357_vm1, %v356_v34, %v355_v42  ;;  %v403_v49 = vrot.slane %v341_v45, 5  ;;  %v533_v50 = vld [vmem:[%s2457_s6 + $0x2] sm:$0x1]  ;;  %607 = vmatpush.msrb.mxu2 %v2467_v1  ;;  %883 = vmatpush.msra.mxu3 %v2467_v1  ;;  %s1822_s17 = scalar_lea.sflag [#allocation4], %s2443_s9 }
  0x43   : > { %v401_v48 = vrot.slane %v340_v44, 6  ;;  %v534_v51 = vld [vmem:[%s2457_s6 + $0x12] sm:$0x1]  ;;  %v361_v52 = vsel %vm360_vm2, %v359_v37, %v358_v47  ;;  %v400_v53 = vsel %vm354_vm0, %v399_v46, %v338_v39  ;;  %v535_v54 = vld [vmem:[%s2457_s6 + $0x22] sm:$0x1]  ;;  %s2220_s28 = sshra.s32 %s1839_s12, 4  ;;  %s2221_s28 = int_to_ptr.hbm [resolvable:$true] %s2220_s28 }
  0x44   : > { %v536_v55 = vld [vmem:[%s2457_s6 + $0x32] sm:$0x1]  ;;  %v537_v56 = vld [vmem:[%s2457_s6 + $0x42] sm:$0x1]  ;;  %v364_v57 = vsel %vm363_vm3, %v362_v38, %v361_v52  ;;  %v549_v60 = vrot.slane %v534_v51, 7  ;;  %v551_v61 = vrot.slane %v535_v54, 6  ;;  %608 = vmatpush.msrb.mxu2 %v2477_v13  ;;  %884 = vmatpush.msra.mxu3 %v2477_v13  ;;  %p2227_p10 = scmp.lt.s32.totalorder %s2221_s28, %s3057_s5 }
  0x45   : > { %v402_v58 = vsel %vm357_vm1, %v401_v48, %v400_v53  ;;  %v538_v59 = vld [vmem:[%s2457_s6 + $0x52] sm:$0x1]  ;;  %v625_v62 = vld [vmem:[%s2457_s6 + $0x3] sm:$0x1]  ;;  %v367_v63 = vsel %vm366_vm4, %v365_v43, %v364_v57  ;;  %v553_v2 = vrot.slane %v536_v55, 5  ;;  %v555_v3 = vrot.slane %v537_v56, 4 }
  0x46   : > { %v404_v0 = vsel %vm360_vm2, %v403_v49, %v402_v58  ;;  %v626_v4 = vld [vmem:[%s2457_s6 + $0x13] sm:$0x1]  ;;  %v627_v5 = vld [vmem:[%s2457_s6 + $0x23] sm:$0x1]  ;;  %1974 = vmatpush.msk.msra.mxu0 %vm372_vm5, %v367_v63  ;;  %v550_v6 = vsel %vm354_vm0, %v549_v60, %v533_v50  ;;  %v557_v7 = vrot.slane %v538_v59, 3  ;;  %791 = vmatpush.msra.mxu2 %v2467_v1  ;;  %s2222_s30 = scalar_lea.hbm %s2221_s28, 64 }
  0x47   : > { %1976 = vmatmul.msk.f32.vlgmr.msra.gmra.mxu1 %vm405_vm7, %v404_v0  ;;  %v628_v8 = vld [vmem:[%s2457_s6 + $0x33] sm:$0x1]  ;;  %v629_v9 = vld [vmem:[%s2457_s6 + $0x43] sm:$0x1]  ;;  %v641_v10 = vrot.slane %v626_v4, 7  ;;  %1975 = vmatmul.msk.f32.vlgmr.msra.gmra.mxu0 %vm368_vm6, %v2490_v20  ;;  %v552_v11 = vsel %vm357_vm1, %v551_v61, %v550_v6  ;;  %v643_v14 = vrot.slane %v627_v5, 6  ;;  %p2223_p1 = scmp.ne.s32.totalorder %s2221_s28, %s2222_s30 }
  0x48   : > { %v630_v12 = vld [vmem:[%s2457_s6 + $0x53] sm:$0x1]  ;;  %v645_v15 = vrot.slane %v628_v8, 5  ;;  %v647_v16 = vrot.slane %v629_v9, 4  ;;  %v554_v17 = vsel %vm360_vm2, %v553_v2, %v552_v11  ;;  %v539_v21 = vld [vmem:[%s2449_s13 + $0x2] sm:$0x1]  ;;  %792 = vmatpush.msra.mxu2 %v2477_v13 }
  0x49   : > { %v642_v18 = vsel %vm354_vm0, %v641_v10, %v625_v62  ;;  %v649_v19 = vrot.slane %v630_v12, 3  ;;  %v540_v22 = vld [vmem:[%s2449_s13 + $0x12] sm:$0x1]  ;;  %v556_v23 = vsel %vm363_vm3, %v555_v3, %v554_v17  ;;  %v541_v25 = vld [vmem:[%s2449_s13 + $0x22] sm:$0x1]  ;;  %p2224_p4 = pnand %p2223_p1, %p2412_p5 }
  0x4a   : > { %v644_v24 = vsel %vm357_vm1, %v643_v14, %v642_v18  ;;  %v542_v26 = vld [vmem:[%s2449_s13 + $0x32] sm:$0x1]  ;;  %v585_v27 = vrot.slane %v540_v22, 7  ;;  %v558_v28 = vsel %vm366_vm4, %v557_v7, %v556_v23  ;;  %v587_v30 = vrot.slane %v541_v25, 6  ;;  %v631_v32 = vld [vmem:[%s2449_s13 + $0x3] sm:$0x1] }
  0x4b   : > { %v646_v29 = vsel %vm360_vm2, %v645_v15, %v644_v24  ;;  %v589_v31 = vrot.slane %v542_v26, 5  ;;  %v632_v33 = vld [vmem:[%s2449_s13 + $0x13] sm:$0x1]  ;;  %1980 = vmatpush.msk.msrb.mxu0 %vm372_vm5, %v558_v28  ;;  %v633_v36 = vld [vmem:[%s2449_s13 + $0x23] sm:$0x1]  ;;  %p2225_p8 = pneg %p2224_p4 }
  0x4c   : > { %v648_v34 = vsel %vm363_vm3, %v647_v16, %v646_v29  ;;  %v586_v35 = vsel %vm354_vm0, %v585_v27, %v539_v21  ;;  %v634_v37 = vld [vmem:[%s2449_s13 + $0x33] sm:$0x1]  ;;  %v677_v38 = vrot.slane %v632_v33, 7  ;;  %v679_v41 = vrot.slane %v633_v36, 6  ;;  %v717_v43 = vld [vmem:[%s2457_s6 + $0x4] sm:$0x1] }
  0x4d   : > { %v650_v39 = vsel %vm366_vm4, %v649_v19, %v648_v34  ;;  %v588_v40 = vsel %vm357_vm1, %v587_v30, %v586_v35  ;;  %v681_v42 = vrot.slane %v634_v37, 5  ;;  %v718_v44 = vld [vmem:[%s2457_s6 + $0x14] sm:$0x1]  ;;  %v719_v47 = vld [vmem:[%s2457_s6 + $0x24] sm:$0x1] }
  0x4e   : > { %1983 = vmatpush.msk.msrb.mxu1 %vm372_vm5, %v650_v39  ;;  %v590_v45 = vsel %vm360_vm2, %v589_v31, %v588_v40  ;;  %v678_v46 = vsel %vm354_vm0, %v677_v38, %v631_v32  ;;  %v720_v48 = vld [vmem:[%s2457_s6 + $0x34] sm:$0x1]  ;;  %v721_v49 = vld [vmem:[%s2457_s6 + $0x44] sm:$0x1]  ;;  %v733_v52 = vrot.slane %v718_v44, 7  ;;  %v735_v53 = vrot.slane %v719_v47, 6 }
  0x4f   : > { %1982 = vmatmul.msk.f32.vlgmr.msrb.gmra.mxu2 %vm405_vm7, %v590_v45  ;;  %v680_v50 = vsel %vm357_vm1, %v679_v41, %v678_v46  ;;  %1984 = vmatmul.msk.f32.vlgmr.msrb.gmra.mxu1 %vm368_vm6, %v2490_v20  ;;  %v722_v51 = vld [vmem:[%s2457_s6 + $0x54] sm:$0x1]  ;;  %v737_v54 = vrot.slane %v720_v48, 5  ;;  %v739_v56 = vrot.slane %v721_v49, 4  ;;  %v809_v58 = vld [vmem:[%s2457_s6 + $0x5] sm:$0x1] }
  0x50   : > { %v682_v55 = vsel %vm360_vm2, %v681_v42, %v680_v50  ;;  %1981 = vmatmul.msk.f32.vlgmr.msrb.gmra.mxu0 %vm368_vm6, %v2490_v20  ;;  %v741_v57 = vrot.slane %v722_v51, 3  ;;  %v810_v59 = vld [vmem:[%s2457_s6 + $0x15] sm:$0x1]  ;;  %975 = vmatpush.msrb.mxu2 %v2467_v1  ;;  %v734_v60 = vsel %vm354_vm0, %v733_v52, %v717_v43  ;;  %v811_v61 = vld [vmem:[%s2457_s6 + $0x25] sm:$0x1] }
  0x51   : > { %1985 = vmatmul.msk.f32.vlgmr.msrb.gmra.mxu3 %vm405_vm7, %v682_v55  ;;  %v812_v62 = vld [vmem:[%s2457_s6 + $0x35] sm:$0x1]  ;;  %v813_v63 = vld [vmem:[%s2457_s6 + $0x45] sm:$0x1]  ;;  %v736_v0 = vsel %vm357_vm1, %v735_v53, %v734_v60  ;;  %v825_v3 = vrot.slane %v810_v59, 7  ;;  %v827_v4 = vrot.slane %v811_v61, 6 }
  0x52   : > { %v814_v2 = vld [vmem:[%s2457_s6 + $0x55] sm:$0x1]  ;;  %v829_v5 = vrot.slane %v812_v62, 5  ;;  %1067 = vmatpush.msrb.mxu3 %v2467_v1  ;;  %976 = vmatpush.msrb.mxu2 %v2477_v13  ;;  %v738_v6 = vsel %vm360_vm2, %v737_v54, %v736_v0  ;;  %v831_v7 = vrot.slane %v813_v63, 4  ;;  %v331_v9 = vld [vmem:[%s3055_s3] sm:$0xf] }
  0x53   : > { %v833_v8 = vrot.slane %v814_v2, 3  ;;  %v723_v10 = vld [vmem:[%s2449_s13 + $0x4] sm:$0x1]  ;;  %v740_v11 = vsel %vm363_vm3, %v739_v56, %v738_v6  ;;  %v826_v12 = vsel %vm354_vm0, %v825_v3, %v809_v58  ;;  %344 = vperm.xlu0 %2115, %v331_v9   ;;  %v724_v14 = vld [vmem:[%s2449_s13 + $0x14] sm:$0x1] }
  0x54   : > { %v725_v15 = vld [vmem:[%s2449_s13 + $0x24] sm:$0x1]  ;;  %v726_v16 = vld [vmem:[%s2449_s13 + $0x34] sm:$0x1]  ;;  %1068 = vmatpush.msrb.mxu3 %v2477_v13  ;;  %v742_v17 = vsel %vm366_vm4, %v741_v57, %v740_v11  ;;  %v828_v18 = vsel %vm357_vm1, %v827_v4, %v826_v12  ;;  %v769_v19 = vrot.slane %v724_v14, 7 }
  0x55   : > { %v771_v21 = vrot.slane %v725_v15, 6  ;;  %v815_v22 = vld [vmem:[%s2449_s13 + $0x5] sm:$0x1]  ;;  %v816_v23 = vld [vmem:[%s2449_s13 + $0x15] sm:$0x1]  ;;  %1986 = vmatpush.msk.msra.mxu0 %vm372_vm5, %v742_v17  ;;  %v830_v24 = vsel %vm360_vm2, %v829_v5, %v828_v18  ;;  %v773_v25 = vrot.slane %v726_v16, 5 }
  0x56   : > { %v817_v26 = vld [vmem:[%s2449_s13 + $0x25] sm:$0x1]  ;;  %v818_v27 = vld [vmem:[%s2449_s13 + $0x35] sm:$0x1]  ;;  %v861_v28 = vrot.slane %v816_v23, 7  ;;  %v832_v29 = vsel %vm363_vm3, %v831_v7, %v830_v24  ;;  %v770_v30 = vsel %vm354_vm0, %v769_v19, %v723_v10 }
  0x57   : > { %v863_v31 = vrot.slane %v817_v26, 6  ;;  %v865_v32 = vrot.slane %v818_v27, 5  ;;  %v901_v33 = vld [vmem:[%s2457_s6 + $0x6] sm:$0x1]  ;;  %v902_v34 = vld [vmem:[%s2457_s6 + $0x16] sm:$0x1]  ;;  %v834_v35 = vsel %vm366_vm4, %v833_v8, %v832_v29  ;;  %v772_v36 = vsel %vm357_vm1, %v771_v21, %v770_v30 }
  0x58   : > { %v862_v37 = vsel %vm354_vm0, %v861_v28, %v815_v22  ;;  %1987 = vmatmul.msk.f32.vlgmr.msra.gmra.mxu0 %vm368_vm6, %v2490_v20  ;;  %v903_v38 = vld [vmem:[%s2457_s6 + $0x26] sm:$0x1]  ;;  %v904_v39 = vld [vmem:[%s2457_s6 + $0x36] sm:$0x1]  ;;  %1989 = vmatpush.msk.msra.mxu1 %vm372_vm5, %v834_v35  ;;  %v774_v41 = vsel %vm360_vm2, %v773_v25, %v772_v36  ;;  %v917_v44 = vrot.slane %v902_v34, 7 }
  0x59   : > { %v905_v40 = vld [vmem:[%s2457_s6 + $0x46] sm:$0x1]  ;;  %v864_v42 = vsel %vm357_vm1, %v863_v31, %v862_v37  ;;  %v906_v43 = vld [vmem:[%s2457_s6 + $0x56] sm:$0x1]  ;;  %v919_v45 = vrot.slane %v903_v38, 6  ;;  %1988 = vmatmul.msk.f32.vlgmr.msra.gmra.mxu2 %vm405_vm7, %v774_v41  ;;  %1990 = vmatmul.msk.f32.vlgmr.msra.gmra.mxu1 %vm368_vm6, %v2490_v20  ;;  %v921_v48 = vrot.slane %v904_v39, 5 }
  0x5a   : > { %v993_v46 = vld [vmem:[%s2457_s6 + $0x7] sm:$0x1]  ;;  %v866_v47 = vsel %vm360_vm2, %v865_v32, %v864_v42  ;;  %v923_v49 = vrot.slane %v905_v40, 4  ;;  %v925_v50 = vrot.slane %v906_v43, 3  ;;  %v994_v51 = vld [vmem:[%s2457_s6 + $0x17] sm:$0x1]  ;;  %v918_v52 = vsel %vm354_vm0, %v917_v44, %v901_v33  ;;  %1159 = vmatpush.msra.mxu2 %v2467_v1 }
  0x5b   : > { %1991 = vmatmul.msk.f32.vlgmr.msra.gmra.mxu3 %vm405_vm7, %v866_v47  ;;  %v995_v53 = vld [vmem:[%s2457_s6 + $0x27] sm:$0x1]  ;;  %v996_v54 = vld [vmem:[%s2457_s6 + $0x37] sm:$0x1]  ;;  %v920_v56 = vsel %vm357_vm1, %v919_v45, %v918_v52  ;;  %v1009_v58 = vrot.slane %v994_v51, 7 }
  0x5c   : > { %v997_v55 = vld [vmem:[%s2457_s6 + $0x47] sm:$0x1]  ;;  %v998_v57 = vld [vmem:[%s2457_s6 + $0x57] sm:$0x1]  ;;  %v1011_v59 = vrot.slane %v995_v53, 6  ;;  %v1013_v60 = vrot.slane %v996_v54, 5  ;;  %1251 = vmatpush.msra.mxu3 %v2467_v1  ;;  %v922_v61 = vsel %vm360_vm2, %v921_v48, %v920_v56  ;;  %1160 = vmatpush.msra.mxu2 %v2477_v13 }
  0x5d   : > { %v1015_v62 = vrot.slane %v997_v55, 4  ;;  %v907_v63 = vld [vmem:[%s2449_s13 + $0x6] sm:$0x1]  ;;  %v908_v0 = vld [vmem:[%s2449_s13 + $0x16] sm:$0x1]  ;;  %v924_v2 = vsel %vm363_vm3, %v923_v49, %v922_v61  ;;  %v1010_v3 = vsel %vm354_vm0, %v1009_v58, %v993_v46  ;;  %v1017_v4 = vrot.slane %v998_v57, 3 }
  0x5e   : > { %v909_v5 = vld [vmem:[%s2449_s13 + $0x26] sm:$0x1]  ;;  %v910_v6 = vld [vmem:[%s2449_s13 + $0x36] sm:$0x1]  ;;  %v953_v7 = vrot.slane %v908_v0, 7  ;;  %1252 = vmatpush.msra.mxu3 %v2477_v13  ;;  %v926_v8 = vsel %vm366_vm4, %v925_v50, %v924_v2  ;;  %v1012_v9 = vsel %vm357_vm1, %v1011_v59, %v1010_v3 }
  0x5f   : > { %v955_v10 = vrot.slane %v909_v5, 6  ;;  %v957_v11 = vrot.slane %v910_v6, 5  ;;  %v999_v12 = vld [vmem:[%s2449_s13 + $0x7] sm:$0x1]  ;;  %v1000_v14 = vld [vmem:[%s2449_s13 + $0x17] sm:$0x1]  ;;  %1992 = vmatpush.msk.msrb.mxu0 %vm372_vm5, %v926_v8  ;;  %v1014_v15 = vsel %vm360_vm2, %v1013_v60, %v1012_v9 }
  0x60   : > { %v954_v16 = vsel %vm354_vm0, %v953_v7, %v907_v63  ;;  %v1001_v17 = vld [vmem:[%s2449_s13 + $0x27] sm:$0x1]  ;;  %v1002_v18 = vld [vmem:[%s2449_s13 + $0x37] sm:$0x1]  ;;  %v1045_v19 = vrot.slane %v1000_v14, 7  ;;  %v1016_v21 = vsel %vm363_vm3, %v1015_v62, %v1014_v15  ;;  %1993 = vmatmul.msk.f32.vlgmr.msrb.gmra.mxu0 %vm368_vm6, %v2490_v20 }
  0x61   : > { %v956_v22 = vsel %vm357_vm1, %v955_v10, %v954_v16  ;;  %v1047_v23 = vrot.slane %v1001_v17, 6  ;;  %v1049_v24 = vrot.slane %v1002_v18, 5  ;;  %v1085_v25 = vld [vmem:[%s2457_s6 + $0x8] sm:$0x1]  ;;  %v1086_v26 = vld [vmem:[%s2457_s6 + $0x18] sm:$0x1]  ;;  %v1018_v27 = vsel %vm366_vm4, %v1017_v4, %v1016_v21 }
  0x62   : > { %v958_v28 = vsel %vm360_vm2, %v957_v11, %v956_v22  ;;  %v1046_v29 = vsel %vm354_vm0, %v1045_v19, %v999_v12  ;;  %v1087_v30 = vld [vmem:[%s2457_s6 + $0x28] sm:$0x1]  ;;  %v1088_v31 = vld [vmem:[%s2457_s6 + $0x38] sm:$0x1]  ;;  %1995 = vmatpush.msk.msrb.mxu1 %vm372_vm5, %v1018_v27  ;;  %v1101_v35 = vrot.slane %v1086_v26, 7 }
  0x63   : > { %v1089_v32 = vld [vmem:[%s2457_s6 + $0x48] sm:$0x1]  ;;  %1994 = vmatmul.msk.f32.vlgmr.msrb.gmra.mxu2 %vm405_vm7, %v958_v28  ;;  %v1048_v33 = vsel %vm357_vm1, %v1047_v23, %v1046_v29  ;;  %v1090_v34 = vld [vmem:[%s2457_s6 + $0x58] sm:$0x1]  ;;  %v1103_v36 = vrot.slane %v1087_v30, 6  ;;  %v1105_v37 = vrot.slane %v1088_v31, 5  ;;  %1996 = vmatmul.msk.f32.vlgmr.msrb.gmra.mxu1 %vm368_vm6, %v2490_v20 }
  0x64   : > { %v1050_v38 = vsel %vm360_vm2, %v1049_v24, %v1048_v33  ;;  %v1107_v39 = vrot.slane %v1089_v32, 4  ;;  %v1109_v40 = vrot.slane %v1090_v34, 3  ;;  %v1177_v41 = vld [vmem:[%s2457_s6 + $0x9] sm:$0x1]  ;;  %v1178_v42 = vld [vmem:[%s2457_s6 + $0x19] sm:$0x1]  ;;  %1343 = vmatpush.msrb.mxu2 %v2467_v1  ;;  %v1102_v43 = vsel %vm354_vm0, %v1101_v35, %v1085_v25 }
  0x65   : > { %1997 = vmatmul.msk.f32.vlgmr.msrb.gmra.mxu3 %vm405_vm7, %v1050_v38  ;;  %v1179_v44 = vld [vmem:[%s2457_s6 + $0x29] sm:$0x1]  ;;  %v1180_v45 = vld [vmem:[%s2457_s6 + $0x39] sm:$0x1]  ;;  %v1104_v47 = vsel %vm357_vm1, %v1103_v36, %v1102_v43  ;;  %v1193_v49 = vrot.slane %v1178_v42, 7 }
  0x66   : > { %v1181_v46 = vld [vmem:[%s2457_s6 + $0x49] sm:$0x1]  ;;  %v1182_v48 = vld [vmem:[%s2457_s6 + $0x59] sm:$0x1]  ;;  %v1195_v50 = vrot.slane %v1179_v44, 6  ;;  %v1197_v51 = vrot.slane %v1180_v45, 5  ;;  %1435 = vmatpush.msrb.mxu3 %v2467_v1  ;;  %1344 = vmatpush.msrb.mxu2 %v2477_v13  ;;  %v1106_v52 = vsel %vm360_vm2, %v1105_v37, %v1104_v47 }
  0x67   : > { %v1199_v53 = vrot.slane %v1181_v46, 4  ;;  %v1091_v54 = vld [vmem:[%s2449_s13 + $0x8] sm:$0x1]  ;;  %v1092_v55 = vld [vmem:[%s2449_s13 + $0x18] sm:$0x1]  ;;  %v1108_v56 = vsel %vm363_vm3, %v1107_v39, %v1106_v52  ;;  %v1194_v57 = vsel %vm354_vm0, %v1193_v49, %v1177_v41  ;;  %v1201_v58 = vrot.slane %v1182_v48, 3 }
  0x68   : > { %v1093_v59 = vld [vmem:[%s2449_s13 + $0x28] sm:$0x1]  ;;  %v1094_v60 = vld [vmem:[%s2449_s13 + $0x38] sm:$0x1]  ;;  %v1137_v61 = vrot.slane %v1092_v55, 7  ;;  %1436 = vmatpush.msrb.mxu3 %v2477_v13  ;;  %v1110_v62 = vsel %vm366_vm4, %v1109_v40, %v1108_v56  ;;  %v1196_v63 = vsel %vm357_vm1, %v1195_v50, %v1194_v57 }
  0x69   : > { %v1139_v0 = vrot.slane %v1093_v59, 6  ;;  %v1141_v2 = vrot.slane %v1094_v60, 5  ;;  %v1183_v3 = vld [vmem:[%s2449_s13 + $0x9] sm:$0x1]  ;;  %v1184_v4 = vld [vmem:[%s2449_s13 + $0x19] sm:$0x1]  ;;  %1998 = vmatpush.msk.msra.mxu0 %vm372_vm5, %v1110_v62  ;;  %v1198_v5 = vsel %vm360_vm2, %v1197_v51, %v1196_v63 }
  0x6a   : > { %v1138_v6 = vsel %vm354_vm0, %v1137_v61, %v1091_v54  ;;  %v1185_v7 = vld [vmem:[%s2449_s13 + $0x29] sm:$0x1]  ;;  %v1186_v8 = vld [vmem:[%s2449_s13 + $0x39] sm:$0x1]  ;;  %v1229_v9 = vrot.slane %v1184_v4, 7  ;;  %v1200_v10 = vsel %vm363_vm3, %v1199_v53, %v1198_v5  ;;  %1999 = vmatmul.msk.f32.vlgmr.msra.gmra.mxu0 %vm368_vm6, %v2490_v20 }
  0x6b   : > { %v1140_v11 = vsel %vm357_vm1, %v1139_v0, %v1138_v6  ;;  %v1231_v12 = vrot.slane %v1185_v7, 6  ;;  %v1233_v14 = vrot.slane %v1186_v8, 5  ;;  %v1269_v15 = vld [vmem:[%s2457_s6 + $0xa] sm:$0x1]  ;;  %v1270_v16 = vld [vmem:[%s2457_s6 + $0x1a] sm:$0x1]  ;;  %v1202_v17 = vsel %vm366_vm4, %v1201_v58, %v1200_v10 }
  0x6c   : > { %v1142_v18 = vsel %vm360_vm2, %v1141_v2, %v1140_v11  ;;  %v1230_v19 = vsel %vm354_vm0, %v1229_v9, %v1183_v3  ;;  %v1271_v21 = vld [vmem:[%s2457_s6 + $0x2a] sm:$0x1]  ;;  %v1272_v22 = vld [vmem:[%s2457_s6 + $0x3a] sm:$0x1]  ;;  %2001 = vmatpush.msk.msra.mxu1 %vm372_vm5, %v1202_v17  ;;  %v1285_v26 = vrot.slane %v1270_v16, 7 }
  0x6d   : > { %v1273_v23 = vld [vmem:[%s2457_s6 + $0x4a] sm:$0x1]  ;;  %2000 = vmatmul.msk.f32.vlgmr.msra.gmra.mxu2 %vm405_vm7, %v1142_v18  ;;  %v1232_v24 = vsel %vm357_vm1, %v1231_v12, %v1230_v19  ;;  %v1274_v25 = vld [vmem:[%s2457_s6 + $0x5a] sm:$0x1]  ;;  %v1287_v27 = vrot.slane %v1271_v21, 6  ;;  %v1289_v28 = vrot.slane %v1272_v22, 5  ;;  %2002 = vmatmul.msk.f32.vlgmr.msra.gmra.mxu1 %vm368_vm6, %v2490_v20 }
  0x6e   : > { %v1234_v29 = vsel %vm360_vm2, %v1233_v14, %v1232_v24  ;;  %v1291_v30 = vrot.slane %v1273_v23, 4  ;;  %v1293_v31 = vrot.slane %v1274_v25, 3  ;;  %v1361_v32 = vld [vmem:[%s2457_s6 + $0xb] sm:$0x1]  ;;  %v1362_v33 = vld [vmem:[%s2457_s6 + $0x1b] sm:$0x1]  ;;  %1527 = vmatpush.msra.mxu2 %v2467_v1  ;;  %v1286_v34 = vsel %vm354_vm0, %v1285_v26, %v1269_v15 }
  0x6f   : > { %2003 = vmatmul.msk.f32.vlgmr.msra.gmra.mxu3 %vm405_vm7, %v1234_v29  ;;  %v1363_v35 = vld [vmem:[%s2457_s6 + $0x2b] sm:$0x1]  ;;  %v1364_v36 = vld [vmem:[%s2457_s6 + $0x3b] sm:$0x1]  ;;  %v1288_v38 = vsel %vm357_vm1, %v1287_v27, %v1286_v34  ;;  %v1377_v40 = vrot.slane %v1362_v33, 7 }
  0x70   : > { %v1365_v37 = vld [vmem:[%s2457_s6 + $0x4b] sm:$0x1]  ;;  %v1366_v39 = vld [vmem:[%s2457_s6 + $0x5b] sm:$0x1]  ;;  %v1379_v41 = vrot.slane %v1363_v35, 6  ;;  %v1381_v42 = vrot.slane %v1364_v36, 5  ;;  %1619 = vmatpush.msra.mxu3 %v2467_v1  ;;  %1528 = vmatpush.msra.mxu2 %v2477_v13  ;;  %v1290_v43 = vsel %vm360_vm2, %v1289_v28, %v1288_v38 }
  0x71   : > { %v1383_v44 = vrot.slane %v1365_v37, 4  ;;  %v1275_v45 = vld [vmem:[%s2449_s13 + $0xa] sm:$0x1]  ;;  %v1276_v46 = vld [vmem:[%s2449_s13 + $0x1a] sm:$0x1]  ;;  %v1292_v47 = vsel %vm363_vm3, %v1291_v30, %v1290_v43  ;;  %v1378_v48 = vsel %vm354_vm0, %v1377_v40, %v1361_v32  ;;  %v1385_v49 = vrot.slane %v1366_v39, 3 }
  0x72   : > { %v1277_v50 = vld [vmem:[%s2449_s13 + $0x2a] sm:$0x1]  ;;  %v1278_v51 = vld [vmem:[%s2449_s13 + $0x3a] sm:$0x1]  ;;  %v1321_v52 = vrot.slane %v1276_v46, 7  ;;  %1620 = vmatpush.msra.mxu3 %v2477_v13  ;;  %v1294_v53 = vsel %vm366_vm4, %v1293_v31, %v1292_v47  ;;  %v1380_v54 = vsel %vm357_vm1, %v1379_v41, %v1378_v48 }
  0x73   : > { %v1323_v55 = vrot.slane %v1277_v50, 6  ;;  %v1325_v56 = vrot.slane %v1278_v51, 5  ;;  %v1367_v57 = vld [vmem:[%s2449_s13 + $0xb] sm:$0x1]  ;;  %v1368_v58 = vld [vmem:[%s2449_s13 + $0x1b] sm:$0x1]  ;;  %2004 = vmatpush.msk.msrb.mxu0 %vm372_vm5, %v1294_v53  ;;  %v1382_v59 = vsel %vm360_vm2, %v1381_v42, %v1380_v54 }
  0x74   : > { %v1322_v60 = vsel %vm354_vm0, %v1321_v52, %v1275_v45  ;;  %v1369_v61 = vld [vmem:[%s2449_s13 + $0x2b] sm:$0x1]  ;;  %v1370_v62 = vld [vmem:[%s2449_s13 + $0x3b] sm:$0x1]  ;;  %v1413_v63 = vrot.slane %v1368_v58, 7  ;;  %v1384_v0 = vsel %vm363_vm3, %v1383_v44, %v1382_v59  ;;  %2005 = vmatmul.msk.f32.vlgmr.msrb.gmra.mxu0 %vm368_vm6, %v2490_v20 }
  0x75   : > { %v1324_v2 = vsel %vm357_vm1, %v1323_v55, %v1322_v60  ;;  %v1415_v3 = vrot.slane %v1369_v61, 6  ;;  %v1417_v4 = vrot.slane %v1370_v62, 5  ;;  %v1453_v5 = vld [vmem:[%s2457_s6 + $0xc] sm:$0x1]  ;;  %v1454_v6 = vld [vmem:[%s2457_s6 + $0x1c] sm:$0x1]  ;;  %v1386_v7 = vsel %vm366_vm4, %v1385_v49, %v1384_v0 }
  0x76   : > { %v1326_v8 = vsel %vm360_vm2, %v1325_v56, %v1324_v2  ;;  %v1414_v9 = vsel %vm354_vm0, %v1413_v63, %v1367_v57  ;;  %v1455_v10 = vld [vmem:[%s2457_s6 + $0x2c] sm:$0x1]  ;;  %v1456_v11 = vld [vmem:[%s2457_s6 + $0x3c] sm:$0x1]  ;;  %2007 = vmatpush.msk.msrb.mxu1 %vm372_vm5, %v1386_v7  ;;  %v1469_v16 = vrot.slane %v1454_v6, 7 }
  0x77   : > { %v1457_v12 = vld [vmem:[%s2457_s6 + $0x4c] sm:$0x1]  ;;  %2006 = vmatmul.msk.f32.vlgmr.msrb.gmra.mxu2 %vm405_vm7, %v1326_v8  ;;  %v1416_v14 = vsel %vm357_vm1, %v1415_v3, %v1414_v9  ;;  %v1458_v15 = vld [vmem:[%s2457_s6 + $0x5c] sm:$0x1]  ;;  %v1471_v17 = vrot.slane %v1455_v10, 6  ;;  %v1473_v18 = vrot.slane %v1456_v11, 5  ;;  %2008 = vmatmul.msk.f32.vlgmr.msrb.gmra.mxu1 %vm368_vm6, %v2490_v20 }
  0x78   : > { %v1418_v19 = vsel %vm360_vm2, %v1417_v4, %v1416_v14  ;;  %v1475_v21 = vrot.slane %v1457_v12, 4  ;;  %v1477_v22 = vrot.slane %v1458_v15, 3  ;;  %v1545_v23 = vld [vmem:[%s2457_s6 + $0xd] sm:$0x1]  ;;  %v1546_v24 = vld [vmem:[%s2457_s6 + $0x1d] sm:$0x1]  ;;  %1711 = vmatpush.msrb.mxu2 %v2467_v1  ;;  %v1470_v25 = vsel %vm354_vm0, %v1469_v16, %v1453_v5 }
  0x79   : > { %2009 = vmatmul.msk.f32.vlgmr.msrb.gmra.mxu3 %vm405_vm7, %v1418_v19  ;;  %v1547_v26 = vld [vmem:[%s2457_s6 + $0x2d] sm:$0x1]  ;;  %v1548_v27 = vld [vmem:[%s2457_s6 + $0x3d] sm:$0x1]  ;;  %v1472_v29 = vsel %vm357_vm1, %v1471_v17, %v1470_v25  ;;  %v1561_v31 = vrot.slane %v1546_v24, 7 }
  0x7a   : > { %v1549_v28 = vld [vmem:[%s2457_s6 + $0x4d] sm:$0x1]  ;;  %v1550_v30 = vld [vmem:[%s2457_s6 + $0x5d] sm:$0x1]  ;;  %v1563_v32 = vrot.slane %v1547_v26, 6  ;;  %v1565_v33 = vrot.slane %v1548_v27, 5  ;;  %1803 = vmatpush.msrb.mxu3 %v2467_v1  ;;  %1712 = vmatpush.msrb.mxu2 %v2477_v13  ;;  %v1474_v34 = vsel %vm360_vm2, %v1473_v18, %v1472_v29 }
  0x7b   : > { %v1567_v35 = vrot.slane %v1549_v28, 4  ;;  %v1459_v36 = vld [vmem:[%s2449_s13 + $0xc] sm:$0x1]  ;;  %v1460_v37 = vld [vmem:[%s2449_s13 + $0x1c] sm:$0x1]  ;;  %v1476_v38 = vsel %vm363_vm3, %v1475_v21, %v1474_v34  ;;  %v1562_v39 = vsel %vm354_vm0, %v1561_v31, %v1545_v23  ;;  %v1569_v40 = vrot.slane %v1550_v30, 3 }
  0x7c   : > { %v1461_v41 = vld [vmem:[%s2449_s13 + $0x2c] sm:$0x1]  ;;  %v1462_v42 = vld [vmem:[%s2449_s13 + $0x3c] sm:$0x1]  ;;  %v1505_v43 = vrot.slane %v1460_v37, 7  ;;  %1804 = vmatpush.msrb.mxu3 %v2477_v13  ;;  %v1478_v1 = vsel %vm366_vm4, %v1477_v22, %v1476_v38  ;;  %v1564_v44 = vsel %vm357_vm1, %v1563_v32, %v1562_v39 }
  0x7d   : > { %v1507_v45 = vrot.slane %v1461_v41, 6  ;;  %v1509_v46 = vrot.slane %v1462_v42, 5  ;;  %v1551_v47 = vld [vmem:[%s2449_s13 + $0xd] sm:$0x1]  ;;  %v1552_v48 = vld [vmem:[%s2449_s13 + $0x1d] sm:$0x1]  ;;  %2010 = vmatpush.msk.msra.mxu0 %vm372_vm5, %v1478_v1  ;;  %v1566_v49 = vsel %vm360_vm2, %v1565_v33, %v1564_v44 }
  0x7e   : > { %v1506_v50 = vsel %vm354_vm0, %v1505_v43, %v1459_v36  ;;  %v1553_v13 = vld [vmem:[%s2449_s13 + $0x2d] sm:$0x1]  ;;  %v1554_v51 = vld [vmem:[%s2449_s13 + $0x3d] sm:$0x1]  ;;  %v1597_v52 = vrot.slane %v1552_v48, 7  ;;  %v1568_v53 = vsel %vm363_vm3, %v1567_v35, %v1566_v49  ;;  %2011 = vmatmul.msk.f32.vlgmr.msra.gmra.mxu0 %vm368_vm6, %v2490_v20 }
  0x7f   : > { %v1508_v54 = vsel %vm357_vm1, %v1507_v45, %v1506_v50  ;;  %v1599_v55 = vrot.slane %v1553_v13, 6  ;;  %v1601_v56 = vrot.slane %v1554_v51, 5  ;;  %v1637_v57 = vld [vmem:[%s2457_s6 + $0xe] sm:$0x1]  ;;  %v1638_v58 = vld [vmem:[%s2457_s6 + $0x1e] sm:$0x1]  ;;  %v1570_v59 = vsel %vm366_vm4, %v1569_v40, %v1568_v53 }
  0x80   : > { %v1510_v60 = vsel %vm360_vm2, %v1509_v46, %v1508_v54  ;;  %v1598_v61 = vsel %vm354_vm0, %v1597_v52, %v1551_v47  ;;  %v1639_v62 = vld [vmem:[%s2457_s6 + $0x2e] sm:$0x1]  ;;  %v1640_v63 = vld [vmem:[%s2457_s6 + $0x3e] sm:$0x1]  ;;  %2013 = vmatpush.msk.msra.mxu1 %vm372_vm5, %v1570_v59  ;;  %v1653_v4 = vrot.slane %v1638_v58, 7 }
  0x81   : > { %v1641_v0 = vld [vmem:[%s2457_s6 + $0x4e] sm:$0x1]  ;;  %2012 = vmatmul.msk.f32.vlgmr.msra.gmra.mxu2 %vm405_vm7, %v1510_v60  ;;  %v1600_v2 = vsel %vm357_vm1, %v1599_v55, %v1598_v61  ;;  %v1642_v3 = vld [vmem:[%s2457_s6 + $0x5e] sm:$0x1]  ;;  %v1655_v5 = vrot.slane %v1639_v62, 6  ;;  %v1657_v6 = vrot.slane %v1640_v63, 5  ;;  %2014 = vmatmul.msk.f32.vlgmr.msra.gmra.mxu1 %vm368_vm6, %v2490_v20 }
  0x82   : > { %v1602_v7 = vsel %vm360_vm2, %v1601_v56, %v1600_v2  ;;  %v1659_v8 = vrot.slane %v1641_v0, 4  ;;  %v1661_v9 = vrot.slane %v1642_v3, 3  ;;  %v1729_v10 = vld [vmem:[%s2457_s6 + $0xf] sm:$0x1]  ;;  %v1730_v11 = vld [vmem:[%s2457_s6 + $0x1f] sm:$0x1]  ;;  %v1654_v12 = vsel %vm354_vm0, %v1653_v4, %v1637_v57 }
  0x83   : > { %2015 = vmatmul.msk.f32.vlgmr.msra.gmra.mxu3 %vm405_vm7, %v1602_v7  ;;  %v1731_v14 = vld [vmem:[%s2457_s6 + $0x2f] sm:$0x1]  ;;  %v1732_v15 = vld [vmem:[%s2457_s6 + $0x3f] sm:$0x1]  ;;  %v1656_v17 = vsel %vm357_vm1, %v1655_v5, %v1654_v12  ;;  %v1745_v19 = vrot.slane %v1730_v11, 7 }
  0x84   : > { %v1733_v16 = vld [vmem:[%s2457_s6 + $0x4f] sm:$0x1]  ;;  %v1734_v18 = vld [vmem:[%s2457_s6 + $0x5f] sm:$0x1]  ;;  %v1747_v21 = vrot.slane %v1731_v14, 6  ;;  %v1749_v22 = vrot.slane %v1732_v15, 5  ;;  %v1658_v23 = vsel %vm360_vm2, %v1657_v6, %v1656_v17 }
  0x85   : > { %v1751_v24 = vrot.slane %v1733_v16, 4  ;;  %v1643_v25 = vld [vmem:[%s2449_s13 + $0xe] sm:$0x1]  ;;  %v1644_v26 = vld [vmem:[%s2449_s13 + $0x1e] sm:$0x1]  ;;  %v1660_v27 = vsel %vm363_vm3, %v1659_v8, %v1658_v23  ;;  %v1746_v28 = vsel %vm354_vm0, %v1745_v19, %v1729_v10  ;;  %v1753_v29 = vrot.slane %v1734_v18, 3 }
  0x86   : > { %v1645_v30 = vld [vmem:[%s2449_s13 + $0x2e] sm:$0x1]  ;;  %v1646_v31 = vld [vmem:[%s2449_s13 + $0x3e] sm:$0x1]  ;;  %v1689_v32 = vrot.slane %v1644_v26, 7  ;;  %v1662_v33 = vsel %vm366_vm4, %v1661_v9, %v1660_v27  ;;  %v1748_v34 = vsel %vm357_vm1, %v1747_v21, %v1746_v28 }
  0x87   : > { %v1691_v35 = vrot.slane %v1645_v30, 6  ;;  %v1693_v36 = vrot.slane %v1646_v31, 5  ;;  %v1735_v37 = vld [vmem:[%s2449_s13 + $0xf] sm:$0x1]  ;;  %v1736_v38 = vld [vmem:[%s2449_s13 + $0x1f] sm:$0x1]  ;;  %2016 = vmatpush.msk.msrb.mxu0 %vm372_vm5, %v1662_v33  ;;  %v1750_v39 = vsel %vm360_vm2, %v1749_v22, %v1748_v34 }
  0x88   : > { %v1690_v40 = vsel %vm354_vm0, %v1689_v32, %v1643_v25  ;;  %v1737_v41 = vld [vmem:[%s2449_s13 + $0x2f] sm:$0x1]  ;;  %v1738_v42 = vld [vmem:[%s2449_s13 + $0x3f] sm:$0x1]  ;;  %v1781_v43 = vrot.slane %v1736_v38, 7  ;;  %v1752_v1 = vsel %vm363_vm3, %v1751_v24, %v1750_v39  ;;  %2017 = vmatmul.msk.f32.vlgmr.msrb.gmra.mxu0 %vm368_vm6, %v2490_v20  ;;  %s2226_s13 = scalar_lea.hbm %s3057_s5, 128 }
  0x89   : > { %v1692_v44 = vsel %vm357_vm1, %v1691_v35, %v1690_v40  ;;  %v1783_v45 = vrot.slane %v1737_v41, 6  ;;  %v1785_v46 = vrot.slane %v1738_v42, 5  ;;  %v1754_v47 = vsel %vm366_vm4, %v1753_v29, %v1752_v1  ;;  %p2228_p12 = scmp.lt.s32.totalorder %s2226_s13, %s2222_s30 }
  0x8a   : > { %v1694_v48 = vsel %vm360_vm2, %v1693_v36, %v1692_v44  ;;  %v1782_v49 = vsel %vm354_vm0, %v1781_v43, %v1735_v37  ;;  %2019 = vmatpush.msk.msrb.mxu1 %vm372_vm5, %v1754_v47 }
  0x8b   : > { %2018 = vmatmul.msk.f32.vlgmr.msrb.gmra.mxu2 %vm405_vm7, %v1694_v48  ;;  %v1784_v50 = vsel %vm357_vm1, %v1783_v45, %v1782_v49  ;;  %2020 = vmatmul.msk.f32.vlgmr.msrb.gmra.mxu1 %vm368_vm6, %v2490_v20  ;;  %p2229_p13 = por %p2228_p12, %p2227_p10 }
  0x8c   : > { %v1786_v13 = vsel %vm360_vm2, %v1785_v46, %v1784_v50 }
  0x8d   : > { %2021 = vmatmul.msk.f32.vlgmr.msrb.gmra.mxu3 %vm405_vm7, %v1786_v13  ;;  %p2230_p0 = pnand %p2229_p13, %p2225_p8 }
  0xc4   : > { %v425_v51 = vpop.f32.mrf.mxu1  ;;  %v392_v52 = vpop.f32.mrf.mxu0 }
  0xc5   : > { %v2863_v53 = vpop.permute.xlu0 %344  ;;  %v486_v54 = vpop.f32.mrf.mxu2 }
  0xc6   : > { %v393_v55 = vadd.f32 %v392_v52, %v2863_v53  ;;  %v487_v56 = vadd.f32 %v486_v54, %v2863_v53  ;;  %v518_v57 = vpop.f32.mrf.mxu3 }
  0xc8   : > { %v428_v58 = vadd.f32 %v425_v51, %v393_v55  ;;  %v521_v59 = vadd.f32 %v518_v57, %v487_v56 }
  0xca   : > { %v430_v60 = vrot.slane %v428_v58, 1  ;;  %v431_v61 = vrot.slane %v428_v58, 2  ;;  %v432_v62 = vrot.slane %v428_v58, 3  ;;  %437 = vst.msk [vmem:[%s2869_s16] sm:$0x1] %vm436_vm8, %v428_v58  ;;  %v523_v20 = vrot.slane %v521_v59, 1 }
  0xcb   : > { %529 = vst.msk [vmem:[%s2869_s16 + $0x1] sm:$0x1] %vm436_vm8, %v521_v59  ;;  %v524_v63 = vrot.slane %v521_v59, 2  ;;  %v525_v2 = vrot.slane %v521_v59, 3 }
  0xcc   : > { %438 = vst.msk [vmem:[%s2869_s16 + $0x10] sm:$0x1] %vm436_vm8, %v430_v60  ;;  %v670_v3 = vpop.f32.mrf.mxu1 }
  0xcd   : > { %v578_v0 = vpop.f32.mrf.mxu0  ;;  %439 = vst.msk [vmem:[%s2869_s16 + $0x20] sm:$0x1] %vm436_vm8, %v431_v61  ;;  %v671_v5 = vadd.f32 %v670_v3, %v2863_v53 }
  0xce   : > { %440 = vst.msk [vmem:[%s2869_s16 + $0x30] sm:$0x1] %vm436_vm8, %v432_v62  ;;  %v579_v4 = vadd.f32 %v578_v0, %v2863_v53 }
  0xcf   : > { %530 = vst.msk [vmem:[%s2869_s16 + $0x11] sm:$0x1] %vm436_vm8, %v523_v20 }
  0xd0   : > { %531 = vst.msk [vmem:[%s2869_s16 + $0x21] sm:$0x1] %vm436_vm8, %v524_v63 }
  0xd1   : > { %532 = vst.msk [vmem:[%s2869_s16 + $0x31] sm:$0x1] %vm436_vm8, %v525_v2 }
  0xd2   : > { %v610_v6 = vpop.f32.mrf.mxu2 }
  0xd3   : > { %v613_v7 = vadd.f32 %v610_v6, %v579_v4 }
  0xd4   : > { %v702_v8 = vpop.f32.mrf.mxu3 }
  0xd5   : > { %v615_v9 = vrot.slane %v613_v7, 1  ;;  %v616_v10 = vrot.slane %v613_v7, 2  ;;  %v617_v11 = vrot.slane %v613_v7, 3  ;;  %621 = vst.msk [vmem:[%s2869_s16 + $0x2] sm:$0x1] %vm436_vm8, %v613_v7  ;;  %v705_v12 = vadd.f32 %v702_v8, %v671_v5  ;;  %v762_v14 = vpop.f32.mrf.mxu0 }
  0xd6   : > { %v854_v17 = vpop.f32.mrf.mxu1  ;;  %v763_v19 = vadd.f32 %v762_v14, %v2863_v53 }
  0xd7   : > { %622 = vst.msk [vmem:[%s2869_s16 + $0x12] sm:$0x1] %vm436_vm8, %v615_v9  ;;  %v707_v15 = vrot.slane %v705_v12, 1  ;;  %v708_v16 = vrot.slane %v705_v12, 2  ;;  %v709_v18 = vrot.slane %v705_v12, 3  ;;  %v855_v21 = vadd.f32 %v854_v17, %v2863_v53 }
  0xd8   : > { %623 = vst.msk [vmem:[%s2869_s16 + $0x22] sm:$0x1] %vm436_vm8, %v616_v10 }
  0xd9   : > { %624 = vst.msk [vmem:[%s2869_s16 + $0x32] sm:$0x1] %vm436_vm8, %v617_v11 }
  0xda   : > { %713 = vst.msk [vmem:[%s2869_s16 + $0x3] sm:$0x1] %vm436_vm8, %v705_v12 }
  0xdb   : > { %714 = vst.msk [vmem:[%s2869_s16 + $0x13] sm:$0x1] %vm436_vm8, %v707_v15 }
  0xdc   : > { %715 = vst.msk [vmem:[%s2869_s16 + $0x23] sm:$0x1] %vm436_vm8, %v708_v16  ;;  %v794_v22 = vpop.f32.mrf.mxu2 }
  0xdd   : > { %716 = vst.msk [vmem:[%s2869_s16 + $0x33] sm:$0x1] %vm436_vm8, %v709_v18  ;;  %v797_v23 = vadd.f32 %v794_v22, %v763_v19  ;;  %v946_v29 = vpop.f32.mrf.mxu0 }
  0xde   : > { %v886_v24 = vpop.f32.mrf.mxu3  ;;  %v947_v34 = vadd.f32 %v946_v29, %v2863_v53 }
  0xdf   : > { %v889_v25 = vadd.f32 %v886_v24, %v855_v21  ;;  %v799_v26 = vrot.slane %v797_v23, 1  ;;  %v800_v27 = vrot.slane %v797_v23, 2  ;;  %v801_v28 = vrot.slane %v797_v23, 3  ;;  %805 = vst.msk [vmem:[%s2869_s16 + $0x4] sm:$0x1] %vm436_vm8, %v797_v23 }
  0xe0   : > { %v1038_v32 = vpop.f32.mrf.mxu1 }
  0xe1   : > { %v891_v30 = vrot.slane %v889_v25, 1  ;;  %897 = vst.msk [vmem:[%s2869_s16 + $0x5] sm:$0x1] %vm436_vm8, %v889_v25  ;;  %v892_v31 = vrot.slane %v889_v25, 2  ;;  %v893_v33 = vrot.slane %v889_v25, 3  ;;  %v1039_v35 = vadd.f32 %v1038_v32, %v2863_v53 }
  0xe2   : > { %806 = vst.msk [vmem:[%s2869_s16 + $0x14] sm:$0x1] %vm436_vm8, %v799_v26 }
  0xe3   : > { %807 = vst.msk [vmem:[%s2869_s16 + $0x24] sm:$0x1] %vm436_vm8, %v800_v27 }
  0xe4   : > { %808 = vst.msk [vmem:[%s2869_s16 + $0x34] sm:$0x1] %vm436_vm8, %v801_v28 }
  0xe5   : > { %898 = vst.msk [vmem:[%s2869_s16 + $0x15] sm:$0x1] %vm436_vm8, %v891_v30 }
  0xe6   : > { %899 = vst.msk [vmem:[%s2869_s16 + $0x25] sm:$0x1] %vm436_vm8, %v892_v31  ;;  %v978_v36 = vpop.f32.mrf.mxu2 }
  0xe7   : > { %900 = vst.msk [vmem:[%s2869_s16 + $0x35] sm:$0x1] %vm436_vm8, %v893_v33  ;;  %v981_v37 = vadd.f32 %v978_v36, %v947_v34  ;;  %v1130_v43 = vpop.f32.mrf.mxu0 }
  0xe8   : > { %v1070_v38 = vpop.f32.mrf.mxu3  ;;  %v1131_v47 = vadd.f32 %v1130_v43, %v2863_v53 }
  0xe9   : > { %v983_v39 = vrot.slane %v981_v37, 1  ;;  %v984_v40 = vrot.slane %v981_v37, 2  ;;  %v985_v41 = vrot.slane %v981_v37, 3  ;;  %989 = vst.msk [vmem:[%s2869_s16 + $0x6] sm:$0x1] %vm436_vm8, %v981_v37  ;;  %v1073_v42 = vadd.f32 %v1070_v38, %v1039_v35 }
  0xea   : > { %v1222_v45 = vpop.f32.mrf.mxu1 }
  0xeb   : > { %990 = vst.msk [vmem:[%s2869_s16 + $0x16] sm:$0x1] %vm436_vm8, %v983_v39  ;;  %v1075_v1 = vrot.slane %v1073_v42, 1  ;;  %v1076_v44 = vrot.slane %v1073_v42, 2  ;;  %v1077_v46 = vrot.slane %v1073_v42, 3  ;;  %v1223_v48 = vadd.f32 %v1222_v45, %v2863_v53 }
  0xec   : > { %991 = vst.msk [vmem:[%s2869_s16 + $0x26] sm:$0x1] %vm436_vm8, %v984_v40 }
  0xed   : > { %992 = vst.msk [vmem:[%s2869_s16 + $0x36] sm:$0x1] %vm436_vm8, %v985_v41 }
  0xee   : > { %1081 = vst.msk [vmem:[%s2869_s16 + $0x7] sm:$0x1] %vm436_vm8, %v1073_v42 }
  0xef   : > { %1082 = vst.msk [vmem:[%s2869_s16 + $0x17] sm:$0x1] %vm436_vm8, %v1075_v1 }
  0xf0   : > { %1083 = vst.msk [vmem:[%s2869_s16 + $0x27] sm:$0x1] %vm436_vm8, %v1076_v44  ;;  %v1162_v49 = vpop.f32.mrf.mxu2 }
  0xf1   : > { %1084 = vst.msk [vmem:[%s2869_s16 + $0x37] sm:$0x1] %vm436_vm8, %v1077_v46  ;;  %v1165_v50 = vadd.f32 %v1162_v49, %v1131_v47  ;;  %v1314_v56 = vpop.f32.mrf.mxu0 }
  0xf2   : > { %v1254_v13 = vpop.f32.mrf.mxu3  ;;  %v1315_v61 = vadd.f32 %v1314_v56, %v2863_v53 }
  0xf3   : > { %v1167_v51 = vrot.slane %v1165_v50, 1  ;;  %v1168_v52 = vrot.slane %v1165_v50, 2  ;;  %v1169_v54 = vrot.slane %v1165_v50, 3  ;;  %1173 = vst.msk [vmem:[%s2869_s16 + $0x8] sm:$0x1] %vm436_vm8, %v1165_v50  ;;  %v1257_v55 = vadd.f32 %v1254_v13, %v1223_v48 }
  0xf4   : > { %v1406_v59 = vpop.f32.mrf.mxu1 }
  0xf5   : > { %1174 = vst.msk [vmem:[%s2869_s16 + $0x18] sm:$0x1] %vm436_vm8, %v1167_v51  ;;  %v1259_v57 = vrot.slane %v1257_v55, 1  ;;  %v1260_v58 = vrot.slane %v1257_v55, 2  ;;  %v1261_v60 = vrot.slane %v1257_v55, 3  ;;  %v1407_v62 = vadd.f32 %v1406_v59, %v2863_v53 }
  0xf6   : > { %1175 = vst.msk [vmem:[%s2869_s16 + $0x28] sm:$0x1] %vm436_vm8, %v1168_v52 }
  0xf7   : > { %1176 = vst.msk [vmem:[%s2869_s16 + $0x38] sm:$0x1] %vm436_vm8, %v1169_v54 }
  0xf8   : > { %1265 = vst.msk [vmem:[%s2869_s16 + $0x9] sm:$0x1] %vm436_vm8, %v1257_v55 }
  0xf9   : > { %1266 = vst.msk [vmem:[%s2869_s16 + $0x19] sm:$0x1] %vm436_vm8, %v1259_v57 }
  0xfa   : > { %1267 = vst.msk [vmem:[%s2869_s16 + $0x29] sm:$0x1] %vm436_vm8, %v1260_v58  ;;  %v1346_v20 = vpop.f32.mrf.mxu2 }
  0xfb   : > { %1268 = vst.msk [vmem:[%s2869_s16 + $0x39] sm:$0x1] %vm436_vm8, %v1261_v60  ;;  %v1349_v63 = vadd.f32 %v1346_v20, %v1315_v61  ;;  %v1498_v6 = vpop.f32.mrf.mxu0 }
  0xfc   : > { %v1438_v0 = vpop.f32.mrf.mxu3  ;;  %v1499_v11 = vadd.f32 %v1498_v6, %v2863_v53 }
  0xfd   : > { %v1351_v2 = vrot.slane %v1349_v63, 1  ;;  %v1352_v3 = vrot.slane %v1349_v63, 2  ;;  %v1353_v4 = vrot.slane %v1349_v63, 3  ;;  %1357 = vst.msk [vmem:[%s2869_s16 + $0xa] sm:$0x1] %vm436_vm8, %v1349_v63  ;;  %v1441_v5 = vadd.f32 %v1438_v0, %v1407_v62 }
  0xfe   : > { %v1590_v9 = vpop.f32.mrf.mxu1 }
  0xff   : > { %1358 = vst.msk [vmem:[%s2869_s16 + $0x1a] sm:$0x1] %vm436_vm8, %v1351_v2  ;;  %v1443_v7 = vrot.slane %v1441_v5, 1  ;;  %v1444_v8 = vrot.slane %v1441_v5, 2  ;;  %v1445_v10 = vrot.slane %v1441_v5, 3  ;;  %v1591_v12 = vadd.f32 %v1590_v9, %v2863_v53 }
 0x100   : > { %1359 = vst.msk [vmem:[%s2869_s16 + $0x2a] sm:$0x1] %vm436_vm8, %v1352_v3 }
 0x101   : > { %1360 = vst.msk [vmem:[%s2869_s16 + $0x3a] sm:$0x1] %vm436_vm8, %v1353_v4 }
 0x102   : > { %1449 = vst.msk [vmem:[%s2869_s16 + $0xb] sm:$0x1] %vm436_vm8, %v1441_v5 }
 0x103   : > { %1450 = vst.msk [vmem:[%s2869_s16 + $0x1b] sm:$0x1] %vm436_vm8, %v1443_v7 }
 0x104   : > { %1451 = vst.msk [vmem:[%s2869_s16 + $0x2b] sm:$0x1] %vm436_vm8, %v1444_v8  ;;  %v1530_v14 = vpop.f32.mrf.mxu2 }
 0x105   : > { %1452 = vst.msk [vmem:[%s2869_s16 + $0x3b] sm:$0x1] %vm436_vm8, %v1445_v10  ;;  %v1533_v15 = vadd.f32 %v1530_v14, %v1499_v11  ;;  %v1682_v22 = vpop.f32.mrf.mxu0 }
 0x106   : > { %v1622_v16 = vpop.f32.mrf.mxu3  ;;  %v1683_v27 = vadd.f32 %v1682_v22, %v2863_v53 }
 0x107   : > { %v1535_v17 = vrot.slane %v1533_v15, 1  ;;  %v1536_v18 = vrot.slane %v1533_v15, 2  ;;  %v1537_v19 = vrot.slane %v1533_v15, 3  ;;  %1541 = vst.msk [vmem:[%s2869_s16 + $0xc] sm:$0x1] %vm436_vm8, %v1533_v15  ;;  %v1625_v21 = vadd.f32 %v1622_v16, %v1591_v12 }
 0x108   : > { %v1774_v25 = vpop.f32.mrf.mxu1 }
 0x109   : > { %1542 = vst.msk [vmem:[%s2869_s16 + $0x1c] sm:$0x1] %vm436_vm8, %v1535_v17  ;;  %v1627_v23 = vrot.slane %v1625_v21, 1  ;;  %v1628_v24 = vrot.slane %v1625_v21, 2  ;;  %v1629_v26 = vrot.slane %v1625_v21, 3  ;;  %v1775_v28 = vadd.f32 %v1774_v25, %v2863_v53 }
 0x10a   : > { %1543 = vst.msk [vmem:[%s2869_s16 + $0x2c] sm:$0x1] %vm436_vm8, %v1536_v18 }
 0x10b   : > { %1544 = vst.msk [vmem:[%s2869_s16 + $0x3c] sm:$0x1] %vm436_vm8, %v1537_v19 }
 0x10c   : > { %1633 = vst.msk [vmem:[%s2869_s16 + $0xd] sm:$0x1] %vm436_vm8, %v1625_v21 }
 0x10d   : > { %1634 = vst.msk [vmem:[%s2869_s16 + $0x1d] sm:$0x1] %vm436_vm8, %v1627_v23 }
 0x10e   : > { %1635 = vst.msk [vmem:[%s2869_s16 + $0x2d] sm:$0x1] %vm436_vm8, %v1628_v24  ;;  %v1714_v29 = vpop.f32.mrf.mxu2 }
 0x10f   : > { %1636 = vst.msk [vmem:[%s2869_s16 + $0x3d] sm:$0x1] %vm436_vm8, %v1629_v26  ;;  %v1717_v30 = vadd.f32 %v1714_v29, %v1683_v27 }
 0x110   : > { %v1806_v31 = vpop.f32.mrf.mxu3 }
 0x111   : > { %v1719_v32 = vrot.slane %v1717_v30, 1  ;;  %v1720_v33 = vrot.slane %v1717_v30, 2  ;;  %v1721_v53 = vrot.slane %v1717_v30, 3  ;;  %1725 = vst.msk [vmem:[%s2869_s16 + $0xe] sm:$0x1] %vm436_vm8, %v1717_v30  ;;  %v1809_v34 = vadd.f32 %v1806_v31, %v1775_v28 }
 0x113   : > { %1726 = vst.msk [vmem:[%s2869_s16 + $0x1e] sm:$0x1] %vm436_vm8, %v1719_v32  ;;  %v1811_v35 = vrot.slane %v1809_v34, 1  ;;  %v1812_v36 = vrot.slane %v1809_v34, 2  ;;  %v1813_v37 = vrot.slane %v1809_v34, 3 }
 0x114   : > { %1727 = vst.msk [vmem:[%s2869_s16 + $0x2e] sm:$0x1] %vm436_vm8, %v1720_v33 }
 0x115   : > { %1728 = vst.msk [vmem:[%s2869_s16 + $0x3e] sm:$0x1] %vm436_vm8, %v1721_v53 }
 0x116   : > { %1817 = vst.msk [vmem:[%s2869_s16 + $0xf] sm:$0x1] %vm436_vm8, %v1809_v34 }
 0x117   : > { %1818 = vst.msk [vmem:[%s2869_s16 + $0x1f] sm:$0x1] %vm436_vm8, %v1811_v35 }
 0x118   : > { %1819 = vst.msk [vmem:[%s2869_s16 + $0x2f] sm:$0x1] %vm436_vm8, %v1812_v36 }
 0x119   : > { %1820 = vst.msk [vmem:[%s2869_s16 + $0x3f] sm:$0x1] %vm436_vm8, %v1813_v37 }
 0x11a   : > { %2233 = shalt.err (!%p2230_p0)
}
 0x11b   : > { %s2302_s9 = smov 128   ;;  %s2303_s27 = smov 8  }
 0x11c   : > { %2040 = dma.vmem_to_hbm [thread:$0]  (%p2412_p5), %s1837_s21, 1024, %s1839_s12, %s1822_s17, %s2302_s9, %s2302_s9, %s2303_s27  }
 0x11d PF: > { %s3084_s6 = sld [smem:[#allocation13_spill]]  ;;  %p2054_p3 = pnand %p1965_p11, %p2379_p6 }
 0x11f   : > { %p2055_p7 = pneg %p2054_p3 }
 0x123   : > { %s1853_s26 = sand.u32 1, %s3084_s6  }
 0x124   : > { %s1854_s11 = scalar_lea.sflag [#allocation4], %s1853_s26 }
 0x125   : > { %2271 = dma.done.wait (%p2055_p7), %s1854_s11, 1024  }
 0x126   : > { %2273 = vsyncadd (%p2055_p7), %s1854_s11, 4294966272  ;;  %s24_s23 = sadd.s32 1, %s2296_s23   ;;  %s3086_s14 = sld [smem:[#allocation14_spill]] }
 0x127   : > { %p21_p9 = scmp.ge.s32.totalorder %s24_s23, 4   ;;  %s3087_s20 = sld [smem:[#allocation18_spill]] }
 0x128   : > { %s3088_s16 = sld [smem:[#allocation16_spill]]  ;;  %s3089_s18 = smov %s2280_s19 }
 0x129   : > { %s3091_s21 = smov %s2292_s22 }
 0x12a   :  { %23 = sbr.rel (!%p21_p9) target bundleno = 10 (0xa), region = 102 }
 0x12c   : > { %s3090_s19 = smov %s3086_s14 }
 0x12e   : > { %s3092_s22 = smov %s3088_s16 }
 0x12f   :  { %1860 = vsyncpa [#allocation3], 1 }
 0x130   :  { %1862 = vsyncpa [#allocation3 + $0x1], 1 }
 0x131   :  { %1863 = vsyncpa [#allocation6], 1 }
 0x132   :  { %1865 = vsyncpa [#allocation6 + $0x1], 1 }
 0x133   :  { %1866 = vsyncpa [#allocation4], 1 }
 0x134   :  { %1868 = vsyncpa [#allocation4 + $0x1], 1 }

</bundles_post_ra>
